<compile_context>
chip_gen: v7x
topology: tpu7x:2x2x1
jax: 0.10.0
libtpu: 0.0.40
codegen_flags: <defaults>
</compile_context>

<pallas_src>
import jax
import jax.numpy as jnp
from jax.experimental import pallas as pl
from jax.experimental.pallas import tpu as pltpu

C = 256  # channel width fixed by the module


def _round_up(x, m):
    return ((x + m - 1) // m) * m


def _choose_tile_l(L, N, tile_l):
    """Pick an L-tile: multiple of 128 (or the full extent for small L)."""
    if L < 128:
        return L  # full-extent last dim -> no (.,128) divisibility requirement
    tl = min(tile_l, _round_up(L, 128))
    tl = max(128, (tl // 128) * 128)
    # Keep >= ~8 grid steps when possible so v7x's 2nd TensorCore is used.
    while tl > 128 and N * pl.cdiv(L, tl) < 8:
        tl = max(128, (tl // 2 // 128) * 128)
    return tl


def resblock_kernel(x_ref, z_ref, wz_ref, bz_ref, w1_ref, b1_ref,
                    w2_ref, b2_ref, o_ref):
    x = x_ref[0]            # (C, TL) f32  (residual path stays f32)
    z = z_ref[0]            # (C, TL) bf16 (matmul operand only)

    # z = relu(lz(z)) -- bf16 MXU operands, f32 accumulation, f32 bias/relu.
    zz = jnp.dot(wz_ref[...], z,
                 preferred_element_type=jnp.float32) + bz_ref[...]
    zz = jnp.maximum(zz, 0.0)

    # res = x + z  (f32)
    res = x + zz

    # h = relu(l1(res))
    h = jnp.dot(w1_ref[...], res.astype(jnp.bfloat16),
                preferred_element_type=jnp.float32) + b1_ref[...]
    h = jnp.maximum(h, 0.0)

    # out = relu(l2(h)) + res
    out = jnp.dot(w2_ref[...], h.astype(jnp.bfloat16),
                  preferred_element_type=jnp.float32) + b2_ref[...]
    out = jnp.maximum(out, 0.0) + res

    o_ref[0] = out.astype(o_ref.dtype)


def resblock_pallas(x_ncl, z_ncl, params, tile_l=1024):
    """x_ncl, z_ncl: (N, 256, L) float32.  params: dict of Conv1d weights/biases."""
    N, Cc, L = x_ncl.shape
    assert Cc == C and z_ncl.shape == x_ncl.shape

    tl = _choose_tile_l(L, N, tile_l)
    n_l = pl.cdiv(L, tl)

    # Activations: x stays f32 (residual precision), z goes to bf16 in HBM
    # (halves its read traffic; it only ever feeds the MXU as bf16 anyway).
    z_bf16 = z_ncl.astype(jnp.bfloat16)

    # PyTorch Conv1d weight (C_out, C_in, 1) -> (C_out, C_in), bf16 for the MXU.
    wz = params["lz_w"][:, :, 0].astype(jnp.bfloat16)
    w1 = params["l1_w"][:, :, 0].astype(jnp.bfloat16)
    w2 = params["l2_w"][:, :, 0].astype(jnp.bfloat16)
    # Biases as (C, 1): broadcast over lanes (L) inside the kernel.
    bz = params["lz_b"].reshape(C, 1).astype(jnp.float32)
    b1 = params["l1_b"].reshape(C, 1).astype(jnp.float32)
    b2 = params["l2_b"].reshape(C, 1).astype(jnp.float32)

    act_spec = pl.BlockSpec((1, C, tl), lambda n, l: (n, 0, l))
    w_spec = pl.BlockSpec((C, C), lambda n, l: (0, 0))    # resident across grid
    b_spec = pl.BlockSpec((C, 1), lambda n, l: (0, 0))

    M = N * L
    cost = pl.CostEstimate(
        flops=3 * 2 * M * C * C,
        transcendentals=0,
        bytes_accessed=(M * C * 4          # x in, f32
                        + M * C * 2        # z in, bf16
                        + M * C * 4        # out, f32
                        + 3 * C * C * 2    # weights, bf16
                        + 3 * C * 4),      # biases, f32
    )

    out = pl.pallas_call(
        resblock_kernel,
        out_shape=jax.ShapeDtypeStruct((N, C, L), jnp.float32),
        grid_spec=pltpu.PrefetchScalarGridSpec(
            num_scalar_prefetch=0,
            grid=(N, n_l),
            in_specs=[act_spec, act_spec,
                      w_spec, b_spec, w_spec, b_spec, w_spec, b_spec],
            out_specs=act_spec,
        ),
        compiler_params=pltpu.CompilerParams(
            dimension_semantics=("parallel", "parallel"),
            vmem_limit_bytes=32 << 20),
        cost_estimate=cost,
    )(x_ncl, z_bf16, wz, bz, w1, b1, w2, b2)

    return out


def resblock_ref(x_ncl, z_ncl, params):
    """Pure-JAX f32 reference matching the PyTorch module."""
    def conv1x1(v, w, b):  # v: (N, C, L)
        return jnp.einsum("oc,ncl->nol", w[:, :, 0], v) + b[None, :, None]
    z = jax.nn.relu(conv1x1(z_ncl, params["lz_w"], params["lz_b"]))
    res = x_ncl + z
    h = jax.nn.relu(conv1x1(res, params["l1_w"], params["l1_b"]))
    return jax.nn.relu(conv1x1(h, params["l2_w"], params["l2_b"])) + res


if __name__ == "__main__":
    key = jax.random.PRNGKey(0)
    k = jax.random.split(key, 8)

    N, L = 2, 8  # small batch / sequence; channels fixed at 256 by the module

    # Deterministic synthetic parameters (Conv1d shapes: (256, 256, 1) / (256,))
    scale = 1.0 / jnp.sqrt(jnp.float32(C))
    params = {
        "lz_w": jax.random.normal(k[0], (C, C, 1), jnp.float32) * scale,
        "lz_b": jax.random.normal(k[1], (C,), jnp.float32) * 0.01,
        "l1_w": jax.random.normal(k[2], (C, C, 1), jnp.float32) * scale,
        "l1_b": jax.random.normal(k[3], (C,), jnp.float32) * 0.01,
        "l2_w": jax.random.normal(k[4], (C, C, 1), jnp.float32) * scale,
        "l2_b": jax.random.normal(k[5], (C,), jnp.float32) * 0.01,
    }

    x = jax.random.normal(k[6], (N, C, L), jnp.float32)
    z = jax.random.normal(k[7], (N, C, L), jnp.float32)

    out = resblock_pallas(x, z, params)
    out = jax.block_until_ready(out)

    ref = resblock_ref(x, z, params)
    assert out.shape == (N, C, L)
    # bf16 matmul operands with f32 accumulation -> ~1e-2 relative tolerance.
    assert jnp.allclose(out, ref, atol=5e-2, rtol=5e-2), "mismatch vs reference"

    print("KERNEL_OK")
</pallas_src>

<mosaic_0001>
module attributes {stable_mosaic.version = 11 : i64} {
  func.func @resblock_kernel(%arg0: i32, %arg1: i32, %arg2: memref<1x256x8xf32, #tpu.memory_space<vmem>>, %arg3: memref<1x256x8xbf16, #tpu.memory_space<vmem>>, %arg4: memref<256x256xbf16, #tpu.memory_space<vmem>>, %arg5: memref<256x1xf32, #tpu.memory_space<vmem>>, %arg6: memref<256x256xbf16, #tpu.memory_space<vmem>>, %arg7: memref<256x1xf32, #tpu.memory_space<vmem>>, %arg8: memref<256x256xbf16, #tpu.memory_space<vmem>>, %arg9: memref<256x1xf32, #tpu.memory_space<vmem>>, %arg10: memref<1x256x8xf32, #tpu.memory_space<vmem>>) attributes {dimension_semantics = [#tpu.dimension_semantics<parallel>, #tpu.dimension_semantics<parallel>], iteration_bounds = array<i64: 2, 1>, scalar_prefetch = 0 : i64, scratch_operands = 0 : i64, tpu.core_type = #tpu.core_type<tc>, window_params = [{transform_indices = @transform_0, window_bounds = array<i64: 1, 256, 8>}, {transform_indices = @transform_1, window_bounds = array<i64: 1, 256, 8>}, {pipeline_mode = #tpu.pipeline_mode<synchronous>, transform_indices = @transform_2, window_bounds = array<i64: 256, 256>}, {pipeline_mode = #tpu.pipeline_mode<synchronous>, transform_indices = @transform_3, window_bounds = array<i64: 256, 1>}, {pipeline_mode = #tpu.pipeline_mode<synchronous>, transform_indices = @transform_4, window_bounds = array<i64: 256, 256>}, {pipeline_mode = #tpu.pipeline_mode<synchronous>, transform_indices = @transform_5, window_bounds = array<i64: 256, 1>}, {pipeline_mode = #tpu.pipeline_mode<synchronous>, transform_indices = @transform_6, window_bounds = array<i64: 256, 256>}, {pipeline_mode = #tpu.pipeline_mode<synchronous>, transform_indices = @transform_7, window_bounds = array<i64: 256, 1>}, {transform_indices = @transform_8, window_bounds = array<i64: 1, 256, 8>}]} {
    %c0 = arith.constant 0 : index
    %c0_0 = arith.constant 0 : index
    %c0_1 = arith.constant 0 : index
    %0 = vector.load %arg2[%c0, %c0_0, %c0_1] : memref<1x256x8xf32, #tpu.memory_space<vmem>>, vector<1x256x8xf32>
    %1 = vector.shape_cast %0 : vector<1x256x8xf32> to vector<256x8xf32>
    %c0_2 = arith.constant 0 : index
    %c0_3 = arith.constant 0 : index
    %c0_4 = arith.constant 0 : index
    %2 = vector.load %arg3[%c0_2, %c0_3, %c0_4] : memref<1x256x8xbf16, #tpu.memory_space<vmem>>, vector<1x256x8xbf16>
    %3 = vector.shape_cast %2 : vector<1x256x8xbf16> to vector<256x8xbf16>
    %c0_5 = arith.constant 0 : index
    %c0_6 = arith.constant 0 : index
    %4 = vector.load %arg4[%c0_5, %c0_6] : memref<256x256xbf16, #tpu.memory_space<vmem>>, vector<256x256xbf16>
    %cst = arith.constant dense<0.000000e+00> : vector<256x8xf32>
    %5 = tpu.matmul %4, %3, %cst {dimension_numbers = #tpu.dot_dimension_numbers<[1], [0], [0], [1], [0, 0, 1, 1], [], []>} : vector<256x256xbf16>, vector<256x8xbf16>, vector<256x8xf32> -> vector<256x8xf32>
    %c0_7 = arith.constant 0 : index
    %c0_8 = arith.constant 0 : index
    %6 = vector.load %arg5[%c0_7, %c0_8] : memref<256x1xf32, #tpu.memory_space<vmem>>, vector<256x1xf32>
    %7 = vector.broadcast %6 : vector<256x1xf32> to vector<256x8xf32>
    %8 = arith.addf %5, %7 : vector<256x8xf32>
    %cst_9 = arith.constant 0.000000e+00 : f32
    %9 = vector.broadcast %cst_9 : f32 to vector<256x8xf32>
    %10 = arith.maximumf %8, %9 : vector<256x8xf32>
    %11 = arith.addf %1, %10 : vector<256x8xf32>
    %c0_10 = arith.constant 0 : index
    %c0_11 = arith.constant 0 : index
    %12 = vector.load %arg6[%c0_10, %c0_11] : memref<256x256xbf16, #tpu.memory_space<vmem>>, vector<256x256xbf16>
    %13 = arith.truncf %11 : vector<256x8xf32> to vector<256x8xbf16>
    %cst_12 = arith.constant dense<0.000000e+00> : vector<256x8xf32>
    %14 = tpu.matmul %12, %13, %cst_12 {dimension_numbers = #tpu.dot_dimension_numbers<[1], [0], [0], [1], [0, 0, 1, 1], [], []>} : vector<256x256xbf16>, vector<256x8xbf16>, vector<256x8xf32> -> vector<256x8xf32>
    %c0_13 = arith.constant 0 : index
    %c0_14 = arith.constant 0 : index
    %15 = vector.load %arg7[%c0_13, %c0_14] : memref<256x1xf32, #tpu.memory_space<vmem>>, vector<256x1xf32>
    %16 = vector.broadcast %15 : vector<256x1xf32> to vector<256x8xf32>
    %17 = arith.addf %14, %16 : vector<256x8xf32>
    %cst_15 = arith.constant 0.000000e+00 : f32
    %18 = vector.broadcast %cst_15 : f32 to vector<256x8xf32>
    %19 = arith.maximumf %17, %18 : vector<256x8xf32>
    %c0_16 = arith.constant 0 : index
    %c0_17 = arith.constant 0 : index
    %20 = vector.load %arg8[%c0_16, %c0_17] : memref<256x256xbf16, #tpu.memory_space<vmem>>, vector<256x256xbf16>
    %21 = arith.truncf %19 : vector<256x8xf32> to vector<256x8xbf16>
    %cst_18 = arith.constant dense<0.000000e+00> : vector<256x8xf32>
    %22 = tpu.matmul %20, %21, %cst_18 {dimension_numbers = #tpu.dot_dimension_numbers<[1], [0], [0], [1], [0, 0, 1, 1], [], []>} : vector<256x256xbf16>, vector<256x8xbf16>, vector<256x8xf32> -> vector<256x8xf32>
    %c0_19 = arith.constant 0 : index
    %c0_20 = arith.constant 0 : index
    %23 = vector.load %arg9[%c0_19, %c0_20] : memref<256x1xf32, #tpu.memory_space<vmem>>, vector<256x1xf32>
    %24 = vector.broadcast %23 : vector<256x1xf32> to vector<256x8xf32>
    %25 = arith.addf %22, %24 : vector<256x8xf32>
    %cst_21 = arith.constant 0.000000e+00 : f32
    %26 = vector.broadcast %cst_21 : f32 to vector<256x8xf32>
    %27 = arith.maximumf %25, %26 : vector<256x8xf32>
    %28 = arith.addf %27, %11 : vector<256x8xf32>
    %c0_22 = arith.constant 0 : index
    %c0_23 = arith.constant 0 : index
    %c0_24 = arith.constant 0 : index
    %29 = vector.load %arg10[%c0_22, %c0_23, %c0_24] : memref<1x256x8xf32, #tpu.memory_space<vmem>>, vector<1x256x8xf32>
    %30 = vector.shape_cast %29 : vector<1x256x8xf32> to vector<256x8xf32>
    %31 = vector.shape_cast %28 : vector<256x8xf32> to vector<1x256x8xf32>
    tpu.vector_store %arg10[%c0_22, %c0_23, %c0_24], %31 {strides = array<i32>} : memref<1x256x8xf32, #tpu.memory_space<vmem>>, vector<1x256x8xf32>,
    return
  }
  func.func @transform_0(%arg0: i32, %arg1: i32) -> (i32, i32, i32) {
    %c0_i32 = arith.constant 0 : i32
    %c0_i32_0 = arith.constant 0 : i32
    return %arg0, %c0_i32, %arg1 : i32, i32, i32
  }
  func.func @transform_1(%arg0: i32, %arg1: i32) -> (i32, i32, i32) {
    %c0_i32 = arith.constant 0 : i32
    %c0_i32_0 = arith.constant 0 : i32
    return %arg0, %c0_i32, %arg1 : i32, i32, i32
  }
  func.func @transform_2(%arg0: i32, %arg1: i32) -> (i32, i32) {
    %c0_i32 = arith.constant 0 : i32
    %c0_i32_0 = arith.constant 0 : i32
    %c0_i32_1 = arith.constant 0 : i32
    return %c0_i32, %c0_i32_0 : i32, i32
  }
  func.func @transform_3(%arg0: i32, %arg1: i32) -> (i32, i32) {
    %c0_i32 = arith.constant 0 : i32
    %c0_i32_0 = arith.constant 0 : i32
    %c0_i32_1 = arith.constant 0 : i32
    return %c0_i32, %c0_i32_0 : i32, i32
  }
  func.func @transform_4(%arg0: i32, %arg1: i32) -> (i32, i32) {
    %c0_i32 = arith.constant 0 : i32
    %c0_i32_0 = arith.constant 0 : i32
    %c0_i32_1 = arith.constant 0 : i32
    return %c0_i32, %c0_i32_0 : i32, i32
  }
  func.func @transform_5(%arg0: i32, %arg1: i32) -> (i32, i32) {
    %c0_i32 = arith.constant 0 : i32
    %c0_i32_0 = arith.constant 0 : i32
    %c0_i32_1 = arith.constant 0 : i32
    return %c0_i32, %c0_i32_0 : i32, i32
  }
  func.func @transform_6(%arg0: i32, %arg1: i32) -> (i32, i32) {
    %c0_i32 = arith.constant 0 : i32
    %c0_i32_0 = arith.constant 0 : i32
    %c0_i32_1 = arith.constant 0 : i32
    return %c0_i32, %c0_i32_0 : i32, i32
  }
  func.func @transform_7(%arg0: i32, %arg1: i32) -> (i32, i32) {
    %c0_i32 = arith.constant 0 : i32
    %c0_i32_0 = arith.constant 0 : i32
    %c0_i32_1 = arith.constant 0 : i32
    return %c0_i32, %c0_i32_0 : i32, i32
  }
  func.func @transform_8(%arg0: i32, %arg1: i32) -> (i32, i32, i32) {
    %c0_i32 = arith.constant 0 : i32
    %c0_i32_0 = arith.constant 0 : i32
    return %arg0, %c0_i32, %arg1 : i32, i32, i32
  }
}

</mosaic_0001>

<bundles_post_ra>
// kernel: tpu_custom_call.1
= control target key start
LH: loop header
LB: loop body
LE: loop exit
PB: predicated region body
PF: predicated region fallthrough
CT: control target
= control target key end

     0   :  { %s3227_s27 = smov 0   ;;  %s3229_s28 = smov 0   ;;  %s4222_s0 = inlined_call_operand.vmem [shape: f32[2,256,8], index: 0, kind: input, shape index: {}]   ;;  %s4223_s1 = inlined_call_operand.vmem [shape: bf16[2,256,8], index: 1, kind: input, shape index: {}]   ;;  %s4224_s2 = inlined_call_operand.vmem [shape: bf16[256,256], index: 2, kind: input, shape index: {}]   ;;  %s4225_s3 = inlined_call_operand.vmem [shape: f32[256,1], index: 3, kind: input, shape index: {}]   ;;  %s4226_s4 = inlined_call_operand.vmem [shape: bf16[256,256], index: 4, kind: input, shape index: {}]   ;;  %s4227_s5 = inlined_call_operand.vmem [shape: f32[256,1], index: 5, kind: input, shape index: {}]   ;;  %s4228_s6 = inlined_call_operand.vmem [shape: bf16[256,256], index: 6, kind: input, shape index: {}]   ;;  %s4229_s7 = inlined_call_operand.vmem [shape: f32[256,1], index: 7, kind: input, shape index: {}]   ;;  %s4230_s8 = inlined_call_operand.vmem [shape: f32[2,256,8], index: 8, kind: output, shape index: {}]  }
   0x1   :  { %s3231_s29 = smov 0  }
   0x2 LB: > { %s30_s30 = sadd.s32 1, %s3175_s28  ;;  %p2494_p0 = scmp.ge.s32.totalorder %s3179_s29, 1  ;;  %s3179_s29 = sphi %s3231_s29, %s18_s29   ;;  %s3175_s28 = sphi %s3229_s28, %s4268_s28   ;;  %s3171_s27 = sphi %s3227_s27, %s4267_s27  }
   0x3   : > { %p32_p1 = scmp.ge.s32.totalorder %s30_s30, 2  ;;  %p296_p2 = scmp.lt.s32.totalorder %s3179_s29, 3 }
   0x5   : > { %s4270_s30 = smov (%p32_p1, %s30_s30), 0  ;;  %p297_p3 = pnand %p2494_p0, %p296_p2 }
   0x7   : > { %300 = sbr.rel (%p297_p3) target bundleno = 1030 (0x406), region = 52 }
   0xe   : > { %v481_v0 = vld [vmem:[%s4225_s3 + $0x80] sm:$0xff]  ;;  %p344_p4 = scmp.lt.s32.totalorder %s3171_s27, 1  ;;  %v3181_v2 = vmov 0   ;;  %v482_v3 = vld [vmem:[%s4225_s3 + $0x88] sm:$0xff]  ;;  %v483_v5 = vld [vmem:[%s4225_s3 + $0x90] sm:$0xff]  ;;  %vm2356_vm0 = vcmask 64512  }
   0xf   : > { %v465_v1 = vld [vmem:[%s4225_s3] sm:$0xff]  ;;  %2996 = vset.pattern.permute.xlu1 %v3181_v2  ;;  %2995 = vset.pattern.permute.xlu0 %v3181_v2  ;;  %v466_v4 = vld [vmem:[%s4225_s3 + $0x8] sm:$0xff]  ;;  %v484_v6 = vld [vmem:[%s4225_s3 + $0x98] sm:$0xff] }
  0x10   : > { %579 = vperm.xlu0 %2995, %v481_v0   ;;  %499 = vperm.xlu1 %2996, %v465_v1   ;;  %s4272_s27 = smov (!%p344_p4, %s3171_s27), 1  ;;  %v467_v10 = vld [vmem:[%s4225_s3 + $0x10] sm:$0xff]  ;;  %v468_v12 = vld [vmem:[%s4225_s3 + $0x18] sm:$0xff]  ;;  %v485_v14 = vld [vmem:[%s4225_s3 + $0xa0] sm:$0xff] }
  0x11   : > { %s2616_s17 = sshll.u32 %s4272_s27, 7  ;;  %v486_v16 = vld [vmem:[%s4225_s3 + $0xa8] sm:$0xff]  ;;  %v469_v18 = vld [vmem:[%s4225_s3 + $0x20] sm:$0xff]  ;;  %v487_v23 = vld [vmem:[%s4225_s3 + $0xb0] sm:$0xff]  ;;  %s2615_s21 = sshll.u32 %s4272_s27, 8 }
  0x12   : > { %s3263_s20 = scalar_lea.vmem %s4223_s1, %s2616_s17  ;;  %v470_v20 = vld [vmem:[%s4225_s3 + $0x28] sm:$0xff]  ;;  %v488_v24 = vld [vmem:[%s4225_s3 + $0xb8] sm:$0xff]  ;;  %v471_v29 = vld [vmem:[%s4225_s3 + $0x30] sm:$0xff]  ;;  %s3682_s24 = scalar_lea.vmem %s4222_s0, %s2615_s21 }
  0x13   : > { %v2997_v7 = vld [vmem:[%s3263_s20 + $0x40] sm:$0xff]   ;;  %v2999_v9 = vld [vmem:[%s3263_s20 + $0x48] sm:$0xff]   ;;  %v3001_v13 = vld [vmem:[%s3263_s20 + $0x50] sm:$0xff]   ;;  %s4115_s15 = scalar_lea.vmem %s4230_s8, %s2615_s21 }
  0x14   : > { %584 = vperm.xlu0 %2995, %v482_v3   ;;  %504 = vperm.xlu1 %2996, %v466_v4   ;;  %v2998_v8 = vld [vmem:[%s3263_s20] sm:$0xff]   ;;  %v3000_v11 = vld [vmem:[%s3263_s20 + $0x8] sm:$0xff]   ;;  %v3002_v15 = vld [vmem:[%s3263_s20 + $0x10] sm:$0xff]  }
  0x15   : > { %2618 = vmatprep.subr.bf16.mxu0 %v2997_v7  ;;  %2954 = vmatprep.subr.bf16.mxu1 %v2997_v7  ;;  %v3003_v17 = vld [vmem:[%s3263_s20 + $0x58] sm:$0xff]   ;;  %v3005_v21 = vld [vmem:[%s3263_s20 + $0x60] sm:$0xff]   ;;  %v3007_v25 = vld [vmem:[%s3263_s20 + $0x68] sm:$0xff]  }
  0x16   : > { %2619 = vmatpush3.bf16.msra.mxu0 %v2998_v8  ;;  %2962 = vmatpush3.bf16.msra.mxu1 %v2998_v8  ;;  %v3004_v19 = vld [vmem:[%s3263_s20 + $0x18] sm:$0xff]   ;;  %v3006_v22 = vld [vmem:[%s3263_s20 + $0x20] sm:$0xff]   ;;  %v3008_v27 = vld [vmem:[%s3263_s20 + $0x28] sm:$0xff]  }
  0x17   : > { %2620 = vmatprep.subr.bf16.mxu0 %v2999_v9  ;;  %2955 = vmatprep.subr.bf16.mxu1 %v2999_v9  ;;  %v3015_v26 = vld [vmem:[%s4224_s2 + $0x4] ss:$8 sps:$4 sm:$0xff]   ;;  %v472_v30 = vld [vmem:[%s4225_s3 + $0x38] sm:$0xff]  ;;  %v3009_v31 = vld [vmem:[%s3263_s20 + $0x70] sm:$0xff]  }
  0x18   : > { %589 = vperm.xlu0 %2995, %v483_v5   ;;  %594 = vperm.xlu1 %2996, %v484_v6   ;;  %v3018_v28 = vld [vmem:[%s4224_s2 + $0x84] ss:$8 sps:$4 sm:$0xff]   ;;  %v3010_v32 = vld [vmem:[%s3263_s20 + $0x30] sm:$0xff]   ;;  %v3011_v35 = vld [vmem:[%s3263_s20 + $0x78] sm:$0xff]  }
  0x19   : > { %945 = vmatprep.mubr.bf16.mxu0 %v3015_v26  ;;  %1009 = vmatprep.mubr.bf16.mxu1 %v3018_v28  ;;  %v489_v33 = vld [vmem:[%s4225_s3 + $0xc0] sm:$0xff]  ;;  %v490_v34 = vld [vmem:[%s4225_s3 + $0xc8] sm:$0xff]  ;;  %v3012_v36 = vld [vmem:[%s3263_s20 + $0x38] sm:$0xff]  }
  0x1a   : > { %2621 = vmatpush3.bf16.msra.mxu0 %v3000_v11  ;;  %2963 = vmatpush3.bf16.msra.mxu1 %v3000_v11  ;;  %v473_v37 = vld [vmem:[%s4225_s3 + $0x40] sm:$0xff]  ;;  %v474_v38 = vld [vmem:[%s4225_s3 + $0x48] sm:$0xff]  ;;  %v3019_v41 = vld [vmem:[%s4224_s2 + $0x14] ss:$8 sps:$4 sm:$0xff]  }
  0x1b   : > { %2622 = vmatprep.subr.bf16.mxu0 %v3001_v13  ;;  %2956 = vmatprep.subr.bf16.mxu1 %v3001_v13  ;;  %v3013_v39 = vld [vmem:[%s4224_s2] ss:$8 sps:$4 sm:$0xff]   ;;  %v3021_v42 = vld [vmem:[%s4224_s2 + $0x94] ss:$8 sps:$4 sm:$0xff]   ;;  %v3023_v47 = vld [vmem:[%s4224_s2 + $0x10] ss:$8 sps:$4 sm:$0xff]  }
  0x1c   : > { %509 = vperm.xlu0 %2995, %v467_v10   ;;  %514 = vperm.xlu1 %2996, %v468_v12   ;;  %v3016_v40 = vld [vmem:[%s4224_s2 + $0x80] ss:$8 sps:$4 sm:$0xff]   ;;  %v491_v43 = vld [vmem:[%s4225_s3 + $0xd0] sm:$0xff]  ;;  %v492_v44 = vld [vmem:[%s4225_s3 + $0xd8] sm:$0xff] }
  0x1d   : > { %v475_v45 = vld [vmem:[%s4225_s3 + $0x50] sm:$0xff]  ;;  %v476_v46 = vld [vmem:[%s4225_s3 + $0x58] sm:$0xff]  ;;  %v3025_v49 = vld [vmem:[%s4224_s2 + $0x24] ss:$8 sps:$4 sm:$0xff]  }
  0x1e   : > { %2623 = vmatpush3.bf16.msra.mxu0 %v3002_v15  ;;  %2964 = vmatpush3.bf16.msra.mxu1 %v3002_v15  ;;  %v3024_v48 = vld [vmem:[%s4224_s2 + $0x90] ss:$8 sps:$4 sm:$0xff]   ;;  %v3027_v50 = vld [vmem:[%s4224_s2 + $0xa4] ss:$8 sps:$4 sm:$0xff]   ;;  %v3029_v55 = vld [vmem:[%s4224_s2 + $0x20] ss:$8 sps:$4 sm:$0xff]  }
  0x1f   : > { %2624 = vmatprep.subr.bf16.mxu0 %v3003_v17  ;;  %2957 = vmatprep.subr.bf16.mxu1 %v3003_v17  ;;  %v493_v51 = vld [vmem:[%s4225_s3 + $0xe0] sm:$0xff]  ;;  %v494_v52 = vld [vmem:[%s4225_s3 + $0xe8] sm:$0xff]  ;;  %v3031_v57 = vld [vmem:[%s4224_s2 + $0x34] ss:$8 sps:$4 sm:$0xff]  }
  0x20   : > { %599 = vperm.xlu0 %2995, %v485_v14   ;;  %604 = vperm.xlu1 %2996, %v486_v16   ;;  %v477_v53 = vld [vmem:[%s4225_s3 + $0x60] sm:$0xff]  ;;  %v478_v54 = vld [vmem:[%s4225_s3 + $0x68] sm:$0xff]  ;;  %v3033_v58 = vld [vmem:[%s4224_s2 + $0xb4] ss:$8 sps:$4 sm:$0xff]  }
  0x21   : > { %v3030_v56 = vld [vmem:[%s4224_s2 + $0xa0] ss:$8 sps:$4 sm:$0xff]   ;;  %v495_v59 = vld [vmem:[%s4225_s3 + $0xf0] sm:$0xff]  ;;  %v496_v60 = vld [vmem:[%s4225_s3 + $0xf8] sm:$0xff] }
  0x22   : > { %2625 = vmatpush3.bf16.msra.mxu0 %v3004_v19  ;;  %2965 = vmatpush3.bf16.msra.mxu1 %v3004_v19  ;;  %v479_v61 = vld [vmem:[%s4225_s3 + $0x70] sm:$0xff]  ;;  %v480_v62 = vld [vmem:[%s4225_s3 + $0x78] sm:$0xff]  ;;  %v3037_v1 = vld [vmem:[%s4224_s2 + $0x44] ss:$8 sps:$4 sm:$0xff]  }
  0x23   : > { %2626 = vmatprep.subr.bf16.mxu0 %v3005_v21  ;;  %2958 = vmatprep.subr.bf16.mxu1 %v3005_v21  ;;  %v3035_v63 = vld [vmem:[%s4224_s2 + $0x30] ss:$8 sps:$4 sm:$0xff]   ;;  %v3039_v2 = vld [vmem:[%s4224_s2 + $0xc4] ss:$8 sps:$4 sm:$0xff]   ;;  %v3041_v7 = vld [vmem:[%s4224_s2 + $0x40] ss:$8 sps:$4 sm:$0xff]  }
  0x24   : > { %519 = vperm.xlu0 %2995, %v469_v18   ;;  %524 = vperm.xlu1 %2996, %v470_v20   ;;  %v3036_v0 = vld [vmem:[%s4224_s2 + $0xb0] ss:$8 sps:$4 sm:$0xff]   ;;  %v1202_v3 = vld [vmem:[%s4227_s5 + $0x80] sm:$0xff]  ;;  %v1203_v4 = vld [vmem:[%s4227_s5 + $0x88] sm:$0xff] }
  0x25   : > { %v1186_v5 = vld [vmem:[%s4227_s5] sm:$0xff]  ;;  %v1187_v6 = vld [vmem:[%s4227_s5 + $0x8] sm:$0xff]  ;;  %v3043_v9 = vld [vmem:[%s4224_s2 + $0x54] ss:$8 sps:$4 sm:$0xff]  }
  0x26   : > { %2627 = vmatpush3.bf16.msra.mxu0 %v3006_v22  ;;  %2966 = vmatpush3.bf16.msra.mxu1 %v3006_v22  ;;  %v3042_v8 = vld [vmem:[%s4224_s2 + $0xc0] ss:$8 sps:$4 sm:$0xff]   ;;  %v1204_v10 = vld [vmem:[%s4227_s5 + $0x90] sm:$0xff]  ;;  %v1205_v11 = vld [vmem:[%s4227_s5 + $0x98] sm:$0xff] }
  0x27   : > { %2628 = vmatprep.subr.bf16.mxu0 %v3007_v25  ;;  %2959 = vmatprep.subr.bf16.mxu1 %v3007_v25  ;;  %v3045_v12 = vld [vmem:[%s4224_s2 + $0xd4] ss:$8 sps:$4 sm:$0xff]   ;;  %v3047_v15 = vld [vmem:[%s4224_s2 + $0x50] ss:$8 sps:$4 sm:$0xff]   ;;  %v3049_v17 = vld [vmem:[%s4224_s2 + $0x64] ss:$8 sps:$4 sm:$0xff]  }
  0x28   : > { %609 = vperm.xlu0 %2995, %v487_v23   ;;  %614 = vperm.xlu1 %2996, %v488_v24   ;;  %v1188_v13 = vld [vmem:[%s4227_s5 + $0x10] sm:$0xff]  ;;  %v1189_v14 = vld [vmem:[%s4227_s5 + $0x18] sm:$0xff]  ;;  %v3051_v18 = vld [vmem:[%s4224_s2 + $0xe4] ss:$8 sps:$4 sm:$0xff]  }
  0x29   : > { %v3048_v16 = vld [vmem:[%s4224_s2 + $0xd0] ss:$8 sps:$4 sm:$0xff]   ;;  %v1206_v19 = vld [vmem:[%s4227_s5 + $0xa0] sm:$0xff]  ;;  %v1207_v20 = vld [vmem:[%s4227_s5 + $0xa8] sm:$0xff] }
  0x2a   : > { %2629 = vmatpush3.bf16.msra.mxu0 %v3008_v27  ;;  %2967 = vmatpush3.bf16.msra.mxu1 %v3008_v27  ;;  %v1190_v21 = vld [vmem:[%s4227_s5 + $0x20] sm:$0xff]  ;;  %v1191_v22 = vld [vmem:[%s4227_s5 + $0x28] sm:$0xff]  ;;  %v3055_v25 = vld [vmem:[%s4224_s2 + $0x74] ss:$8 sps:$4 sm:$0xff]  }
  0x2b   : > { %2630 = vmatprep.subr.bf16.mxu0 %v3009_v31  ;;  %2960 = vmatprep.subr.bf16.mxu1 %v3009_v31  ;;  %v3053_v23 = vld [vmem:[%s4224_s2 + $0x60] ss:$8 sps:$4 sm:$0xff]   ;;  %v3057_v26 = vld [vmem:[%s4224_s2 + $0xf4] ss:$8 sps:$4 sm:$0xff]   ;;  %v3059_v31 = vld [vmem:[%s4224_s2 + $0x70] ss:$8 sps:$4 sm:$0xff]  }
  0x2c   : > { %529 = vperm.xlu0 %2995, %v471_v29   ;;  %534 = vperm.xlu1 %2996, %v472_v30   ;;  %v3054_v24 = vld [vmem:[%s4224_s2 + $0xe0] ss:$8 sps:$4 sm:$0xff]   ;;  %v1208_v27 = vld [vmem:[%s4227_s5 + $0xb0] sm:$0xff]  ;;  %v1209_v28 = vld [vmem:[%s4227_s5 + $0xb8] sm:$0xff] }
  0x2d   : > { %v1192_v29 = vld [vmem:[%s4227_s5 + $0x30] sm:$0xff]  ;;  %v1193_v30 = vld [vmem:[%s4227_s5 + $0x38] sm:$0xff] }
  0x2e   : > { %2631 = vmatpush3.bf16.msra.mxu0 %v3010_v32  ;;  %2968 = vmatpush3.bf16.msra.mxu1 %v3010_v32  ;;  %v3060_v32 = vld [vmem:[%s4224_s2 + $0xf0] ss:$8 sps:$4 sm:$0xff]  }
  0x2f   : > { %2632 = vmatprep.subr.bf16.mxu0 %v3011_v35  ;;  %2961 = vmatprep.subr.bf16.mxu1 %v3011_v35  ;;  %v1194_v35 = vld [vmem:[%s4227_s5 + $0x40] sm:$0xff] }
  0x30   : > { %619 = vperm.xlu0 %2995, %v489_v33   ;;  %624 = vperm.xlu1 %2996, %v490_v34   ;;  %v1210_v33 = vld [vmem:[%s4227_s5 + $0xc0] sm:$0xff]  ;;  %v1211_v34 = vld [vmem:[%s4227_s5 + $0xc8] sm:$0xff] }
  0x32   : > { %2633 = vmatpush3.bf16.msra.mxu0 %v3012_v36  ;;  %2969 = vmatpush3.bf16.msra.mxu1 %v3012_v36  ;;  %v1195_v36 = vld [vmem:[%s4227_s5 + $0x48] sm:$0xff] }
  0x34   : > { %539 = vperm.xlu0 %2995, %v473_v37   ;;  %544 = vperm.xlu1 %2996, %v474_v38   ;;  %v1212_v37 = vld [vmem:[%s4227_s5 + $0xd0] sm:$0xff]  ;;  %v1213_v38 = vld [vmem:[%s4227_s5 + $0xd8] sm:$0xff] }
  0x35   : > { %946 = vmatmul.mubr.bf16.vlgmr.msra.gmra.mrb[0].mxu0 %v3013_v39  ;;  %1010 = vmatmul.mubr.bf16.vlgmr.msra.gmra.mrb[0].mxu1 %v3016_v40  ;;  %v1196_v39 = vld [vmem:[%s4227_s5 + $0x50] sm:$0xff]  ;;  %v1197_v40 = vld [vmem:[%s4227_s5 + $0x58] sm:$0xff] }
  0x36   : > { %953 = vmatprep.mubr.bf16.mxu0 %v3019_v41  ;;  %1017 = vmatprep.mubr.bf16.mxu1 %v3021_v42  ;;  %v1214_v41 = vld [vmem:[%s4227_s5 + $0xe0] sm:$0xff]  ;;  %v1215_v42 = vld [vmem:[%s4227_s5 + $0xe8] sm:$0xff] }
  0x38   : > { %629 = vperm.xlu0 %2995, %v491_v43   ;;  %634 = vperm.xlu1 %2996, %v492_v44   ;;  %v1198_v43 = vld [vmem:[%s4227_s5 + $0x60] sm:$0xff]  ;;  %v1199_v44 = vld [vmem:[%s4227_s5 + $0x68] sm:$0xff] }
  0x3c   : > { %549 = vperm.xlu0 %2995, %v475_v45   ;;  %554 = vperm.xlu1 %2996, %v476_v46   ;;  %v1216_v45 = vld [vmem:[%s4227_s5 + $0xf0] sm:$0xff]  ;;  %v1217_v46 = vld [vmem:[%s4227_s5 + $0xf8] sm:$0xff] }
  0x3d   : > { %954 = vmatmul.mubr.bf16.gmra.mrb[4].mxu0 %v3023_v47  ;;  %1018 = vmatmul.mubr.bf16.gmra.mrb[4].mxu1 %v3024_v48  ;;  %v1200_v47 = vld [vmem:[%s4227_s5 + $0x70] sm:$0xff]  ;;  %v1201_v48 = vld [vmem:[%s4227_s5 + $0x78] sm:$0xff] }
  0x3e   : > { %961 = vmatprep.mubr.bf16.mxu0 %v3025_v49  ;;  %1025 = vmatprep.mubr.bf16.mxu1 %v3027_v50  ;;  %v1779_v49 = vld [vmem:[%s4229_s7] sm:$0xff]  ;;  %v1780_v50 = vld [vmem:[%s4229_s7 + $0x8] sm:$0xff] }
  0x40   : > { %639 = vperm.xlu0 %2995, %v493_v51   ;;  %644 = vperm.xlu1 %2996, %v494_v52   ;;  %v1781_v51 = vld [vmem:[%s4229_s7 + $0x10] sm:$0xff]  ;;  %v1782_v52 = vld [vmem:[%s4229_s7 + $0x18] sm:$0xff] }
  0x44   : > { %559 = vperm.xlu0 %2995, %v477_v53   ;;  %564 = vperm.xlu1 %2996, %v478_v54   ;;  %v1783_v53 = vld [vmem:[%s4229_s7 + $0x20] sm:$0xff]  ;;  %v1784_v54 = vld [vmem:[%s4229_s7 + $0x28] sm:$0xff] }
  0x45   : > { %962 = vmatmul.mubr.bf16.gmra.mrb[8].mxu0 %v3029_v55  ;;  %1026 = vmatmul.mubr.bf16.gmra.mrb[8].mxu1 %v3030_v56  ;;  %v1785_v55 = vld [vmem:[%s4229_s7 + $0x30] sm:$0xff]  ;;  %v1786_v56 = vld [vmem:[%s4229_s7 + $0x38] sm:$0xff] }
  0x46   : > { %969 = vmatprep.mubr.bf16.mxu0 %v3031_v57  ;;  %1033 = vmatprep.mubr.bf16.mxu1 %v3033_v58  ;;  %v1787_v57 = vld [vmem:[%s4229_s7 + $0x40] sm:$0xff]  ;;  %v1788_v58 = vld [vmem:[%s4229_s7 + $0x48] sm:$0xff] }
  0x48   : > { %649 = vperm.xlu0 %2995, %v495_v59   ;;  %654 = vperm.xlu1 %2996, %v496_v60   ;;  %v1789_v59 = vld [vmem:[%s4229_s7 + $0x50] sm:$0xff]  ;;  %v1790_v60 = vld [vmem:[%s4229_s7 + $0x58] sm:$0xff] }
  0x4c   : > { %569 = vperm.xlu0 %2995, %v479_v61   ;;  %574 = vperm.xlu1 %2996, %v480_v62   ;;  %v1791_v61 = vld [vmem:[%s4229_s7 + $0x60] sm:$0xff]  ;;  %v1792_v62 = vld [vmem:[%s4229_s7 + $0x68] sm:$0xff] }
  0x4d   : > { %970 = vmatmul.mubr.bf16.gmra.mrb[12].mxu0 %v3035_v63  ;;  %1034 = vmatmul.mubr.bf16.gmra.mrb[12].mxu1 %v3036_v0  ;;  %v1793_v63 = vld [vmem:[%s4229_s7 + $0x70] sm:$0xff]  ;;  %v1794_v0 = vld [vmem:[%s4229_s7 + $0x78] sm:$0xff] }
  0x4e   : > { %977 = vmatprep.mubr.bf16.mxu0 %v3037_v1  ;;  %1041 = vmatprep.mubr.bf16.mxu1 %v3039_v2  ;;  %v1795_v1 = vld [vmem:[%s4229_s7 + $0x80] sm:$0xff]  ;;  %v1796_v2 = vld [vmem:[%s4229_s7 + $0x88] sm:$0xff] }
  0x50   : > { %1300 = vperm.xlu0 %2995, %v1202_v3   ;;  %1305 = vperm.xlu1 %2996, %v1203_v4   ;;  %v1797_v3 = vld [vmem:[%s4229_s7 + $0x90] sm:$0xff]  ;;  %v1798_v4 = vld [vmem:[%s4229_s7 + $0x98] sm:$0xff] }
  0x54   : > { %1220 = vperm.xlu0 %2995, %v1186_v5   ;;  %1225 = vperm.xlu1 %2996, %v1187_v6   ;;  %v1799_v5 = vld [vmem:[%s4229_s7 + $0xa0] sm:$0xff]  ;;  %v1800_v6 = vld [vmem:[%s4229_s7 + $0xa8] sm:$0xff] }
  0x55   : > { %978 = vmatmul.mubr.bf16.gmra.mrb[16].mxu0 %v3041_v7  ;;  %1042 = vmatmul.mubr.bf16.gmra.mrb[16].mxu1 %v3042_v8  ;;  %v1801_v7 = vld [vmem:[%s4229_s7 + $0xb0] sm:$0xff]  ;;  %v1802_v8 = vld [vmem:[%s4229_s7 + $0xb8] sm:$0xff] }
  0x56   : > { %985 = vmatprep.mubr.bf16.mxu0 %v3043_v9  ;;  %1049 = vmatprep.mubr.bf16.mxu1 %v3045_v12  ;;  %v1803_v9 = vld [vmem:[%s4229_s7 + $0xc0] sm:$0xff]  ;;  %v1806_v12 = vld [vmem:[%s4229_s7 + $0xd8] sm:$0xff] }
  0x58   : > { %1310 = vperm.xlu0 %2995, %v1204_v10   ;;  %1315 = vperm.xlu1 %2996, %v1205_v11   ;;  %v1804_v10 = vld [vmem:[%s4229_s7 + $0xc8] sm:$0xff]  ;;  %v1805_v11 = vld [vmem:[%s4229_s7 + $0xd0] sm:$0xff] }
  0x5c   : > { %1230 = vperm.xlu0 %2995, %v1188_v13   ;;  %1235 = vperm.xlu1 %2996, %v1189_v14   ;;  %v1807_v13 = vld [vmem:[%s4229_s7 + $0xe0] sm:$0xff]  ;;  %v1808_v14 = vld [vmem:[%s4229_s7 + $0xe8] sm:$0xff] }
  0x5d   : > { %986 = vmatmul.mubr.bf16.gmra.mrb[20].mxu0 %v3047_v15  ;;  %1050 = vmatmul.mubr.bf16.gmra.mrb[20].mxu1 %v3048_v16  ;;  %v1809_v15 = vld [vmem:[%s4229_s7 + $0xf0] sm:$0xff]  ;;  %v1810_v16 = vld [vmem:[%s4229_s7 + $0xf8] sm:$0xff] }
  0x5e   : > { %993 = vmatprep.mubr.bf16.mxu0 %v3049_v17  ;;  %1057 = vmatprep.mubr.bf16.mxu1 %v3051_v18  ;;  %v3063_v17 = vld [vmem:[%s4226_s4 + $0x4] ss:$8 sps:$4 sm:$0xff]  }
  0x60   : > { %1320 = vperm.xlu0 %2995, %v1206_v19   ;;  %1325 = vperm.xlu1 %2996, %v1207_v20  }
  0x64   : > { %1240 = vperm.xlu0 %2995, %v1190_v21   ;;  %1245 = vperm.xlu1 %2996, %v1191_v22  }
  0x65   : > { %994 = vmatmul.mubr.bf16.gmra.mrb[24].mxu0 %v3053_v23  ;;  %1058 = vmatmul.mubr.bf16.gmra.mrb[24].mxu1 %v3054_v24 }
  0x66   : > { %1001 = vmatprep.mubr.bf16.mxu0 %v3055_v25  ;;  %1065 = vmatprep.mubr.bf16.mxu1 %v3057_v26 }
  0x68   : > { %1330 = vperm.xlu0 %2995, %v1208_v27   ;;  %1335 = vperm.xlu1 %2996, %v1209_v28  }
  0x6c   : > { %1250 = vperm.xlu0 %2995, %v1192_v29   ;;  %1255 = vperm.xlu1 %2996, %v1193_v30  }
  0x6d   : > { %1002 = vmatmul.mubr.bf16.gmra.mrb[28].mxu0 %v3059_v31  ;;  %1066 = vmatmul.mubr.bf16.gmra.mrb[28].mxu1 %v3060_v32 }
  0x6e   : > { %1570 = vmatprep.mubr.bf16.mxu1 %v3063_v17 }
  0x70   : > { %1340 = vperm.xlu0 %2995, %v1210_v33   ;;  %1345 = vperm.xlu1 %2996, %v1211_v34  }
  0x74   : > { %1260 = vperm.xlu0 %2995, %v1194_v35   ;;  %1265 = vperm.xlu1 %2996, %v1195_v36  }
  0x78   : > { %1350 = vperm.xlu0 %2995, %v1212_v37   ;;  %1355 = vperm.xlu1 %2996, %v1213_v38  }
  0x7c   : > { %1270 = vperm.xlu0 %2995, %v1196_v39   ;;  %1275 = vperm.xlu1 %2996, %v1197_v40  }
  0x80   : > { %1360 = vperm.xlu0 %2995, %v1214_v41   ;;  %1365 = vperm.xlu1 %2996, %v1215_v42  }
  0x84   : > { %1280 = vperm.xlu0 %2995, %v1198_v43   ;;  %1285 = vperm.xlu1 %2996, %v1199_v44  }
  0x88   : > { %1370 = vperm.xlu0 %2995, %v1216_v45   ;;  %1375 = vperm.xlu1 %2996, %v1217_v46  }
  0x8c   : > { %1290 = vperm.xlu0 %2995, %v1200_v47   ;;  %1295 = vperm.xlu1 %2996, %v1201_v48  }
  0x8f   : > { %v580_v18 = vpop.permute.xlu0 %579  ;;  %v500_v19 = vpop.permute.xlu1 %499 }
  0x90   : > { %1813 = vperm.xlu0 %2995, %v1779_v49   ;;  %1818 = vperm.xlu1 %2996, %v1780_v50   ;;  %v369_v50 = vld [vmem:[%s3682_s24] sm:$0xff] }
  0x93   : > { %v585_v20 = vpop.permute.xlu0 %584  ;;  %v505_v21 = vpop.permute.xlu1 %504 }
  0x94   : > { %1823 = vperm.xlu0 %2995, %v1781_v51   ;;  %1828 = vperm.xlu1 %2996, %v1782_v52  }
  0x97   : > { %v590_v22 = vpop.permute.xlu0 %589  ;;  %v3656_v23 = vpop.permute.xlu1 %594 }
  0x98   : > { %1833 = vperm.xlu0 %2995, %v1783_v53   ;;  %1838 = vperm.xlu1 %2996, %v1784_v54  }
  0x9b   : > { %v510_v24 = vpop.permute.xlu0 %509  ;;  %v515_v25 = vpop.permute.xlu1 %514 }
  0x9c   : > { %1843 = vperm.xlu0 %2995, %v1785_v55   ;;  %1848 = vperm.xlu1 %2996, %v1786_v56   ;;  %v385_v55 = vld [vmem:[%s3682_s24 + $0x80] sm:$0xff]  ;;  %v370_v56 = vld [vmem:[%s3682_s24 + $0x8] sm:$0xff] }
  0x9f   : > { %v3658_v26 = vpop.permute.xlu0 %599  ;;  %v3660_v27 = vpop.permute.xlu1 %604 }
  0xa0   : > { %1853 = vperm.xlu0 %2995, %v1787_v57   ;;  %1858 = vperm.xlu1 %2996, %v1788_v58   ;;  %v386_v57 = vld [vmem:[%s3682_s24 + $0x88] sm:$0xff] }
  0xa3   : > { %v3662_v28 = vpop.permute.xlu0 %519  ;;  %v3664_v29 = vpop.permute.xlu1 %524 }
  0xa4   : > { %1863 = vperm.xlu0 %2995, %v1789_v59   ;;  %1868 = vperm.xlu1 %2996, %v1790_v60  }
  0xa7   : > { %v3666_v30 = vpop.permute.xlu0 %609  ;;  %v3668_v31 = vpop.permute.xlu1 %614 }
  0xa8   : > { %1873 = vperm.xlu0 %2995, %v1791_v61   ;;  %1878 = vperm.xlu1 %2996, %v1792_v62  }
  0xab   : > { %v3670_v32 = vpop.permute.xlu0 %529  ;;  %v3672_v33 = vpop.permute.xlu1 %534 }
  0xac   : > { %1883 = vperm.xlu0 %2995, %v1793_v63   ;;  %1888 = vperm.xlu1 %2996, %v1794_v0  }
  0xaf   : > { %v3675_v38 = vpop.permute.xlu0 %619  ;;  %v3684_v49 = vpop.permute.xlu1 %624 }
  0xb0   : > { %1893 = vperm.xlu0 %2995, %v1795_v1   ;;  %1898 = vperm.xlu1 %2996, %v1796_v2  }
  0xb3   : > { %v3690_v0 = vpop.permute.xlu0 %539  ;;  %v3704_v17 = vpop.permute.xlu1 %544 }
  0xb4   : > { %1903 = vperm.xlu0 %2995, %v1797_v3   ;;  %1908 = vperm.xlu1 %2996, %v1798_v4  }
  0xb8   : > { %1913 = vperm.xlu0 %2995, %v1799_v5   ;;  %1918 = vperm.xlu1 %2996, %v1800_v6  }
  0xbc   : > { %1923 = vperm.xlu0 %2995, %v1801_v7   ;;  %1928 = vperm.xlu1 %2996, %v1802_v8  }
  0xc0   : > { %1933 = vperm.xlu0 %2995, %v1803_v9   ;;  %1938 = vperm.xlu1 %2996, %v1804_v10  }
  0xc4   : > { %1943 = vperm.xlu0 %2995, %v1805_v11   ;;  %1948 = vperm.xlu1 %2996, %v1806_v12  }
  0xc8   : > { %1953 = vperm.xlu0 %2995, %v1807_v13   ;;  %1958 = vperm.xlu1 %2996, %v1808_v14  }
  0xcc   : > { %1963 = vperm.xlu0 %2995, %v1809_v15   ;;  %1968 = vperm.xlu1 %2996, %v1810_v16  }
 0x108   : > { %v2634_v34 = vpop.f32.mrb[0].mxu0  ;;  %v2682_v35 = vpop.f32.mrb[0].mxu1 }
 0x109   : > { %v2635_v36 = vpop.f32.mrb[1].mxu0  ;;  %v2683_v37 = vpop.f32.mrb[1].mxu1 }
 0x10a   : > { %v2636_v39 = vadd.f32 %v2635_v36, %v2634_v34  ;;  %v2684_v40 = vadd.f32 %v2683_v37, %v2682_v35  ;;  %v2637_v41 = vpop.f32.mrb[2].mxu0  ;;  %v2685_v42 = vpop.f32.mrb[2].mxu1  ;;  %v372_v34 = vld [vmem:[%s3682_s24 + $0x18] sm:$0xff] }
 0x10b   : > { %v2638_v45 = vpop.f32.mrb[3].mxu0  ;;  %v2686_v46 = vpop.f32.mrb[3].mxu1  ;;  %v388_v35 = vld [vmem:[%s3682_s24 + $0x98] sm:$0xff] }
 0x10c   : > { %v948_v43 = vadd.f32 %v2636_v39, %v500_v19  ;;  %v1012_v44 = vadd.f32 %v2684_v40, %v580_v18  ;;  %v2639_v47 = vadd.f32 %v2638_v45, %v2637_v41  ;;  %v2687_v48 = vadd.f32 %v2686_v46, %v2685_v42  ;;  %v371_v18 = vld [vmem:[%s3682_s24 + $0x10] sm:$0xff] }
 0x10e   : > { %v1074_v51 = vmax.f32 %v948_v43, 0.0  ;;  %v1090_v52 = vmax.f32 %v1012_v44, 0.0  ;;  %v951_v53 = vadd.f32 %v2639_v47, %v505_v21  ;;  %v1015_v54 = vadd.f32 %v2687_v48, %v585_v20  ;;  %v3711_v43 = vpop.permute.xlu0 %629 }
 0x110   : > { %v2640_v58 = vpop.f32.mrb[4].mxu0  ;;  %v2688_v59 = vpop.f32.mrb[4].mxu1  ;;  %v1075_v60 = vmax.f32 %v951_v53, 0.0  ;;  %v1091_v61 = vmax.f32 %v1015_v54, 0.0  ;;  %v3692_v3 = vadd.f32 %v1074_v51, %v369_v50  ;;  %v3694_v4 = vadd.f32 %v1090_v52, %v385_v55 }
 0x111   : > { %v2641_v62 = vpop.f32.mrb[5].mxu0  ;;  %v2689_v63 = vpop.f32.mrb[5].mxu1 }
 0x112   : > { %v2642_v1 = vadd.f32 %v2641_v62, %v2640_v58  ;;  %v2690_v2 = vadd.f32 %v2689_v63, %v2688_v59  ;;  %v3696_v5 = vadd.f32 %v1075_v60, %v370_v56  ;;  %v3698_v6 = vadd.f32 %v1091_v61, %v386_v57  ;;  %v2643_v7 = vpop.f32.mrb[6].mxu0  ;;  %v2691_v8 = vpop.f32.mrb[6].mxu1  ;;  %v373_v60 = vld [vmem:[%s3682_s24 + $0x20] sm:$0xff] }
 0x113   : > { %v2644_v11 = vpop.f32.mrb[7].mxu0  ;;  %v2692_v12 = vpop.f32.mrb[7].mxu1  ;;  %v389_v63 = vld [vmem:[%s3682_s24 + $0xa0] sm:$0xff] }
 0x114   : > { %v956_v9 = vadd.f32 %v2642_v1, %v510_v24  ;;  %v1020_v10 = vadd.f32 %v2690_v2, %v590_v22  ;;  %v1170_v13 = vpack.c.bf16 %v3696_v5, %v3692_v3  ;;  %v2645_v14 = vadd.f32 %v2644_v11, %v2643_v7  ;;  %v387_v22 = vld [vmem:[%s3682_s24 + $0x90] sm:$0xff]  ;;  %v3727_v59 = vpop.permute.xlu1 %634  ;;  %v374_v1 = vld [vmem:[%s3682_s24 + $0x28] sm:$0xff] }
 0x115   : > { %v2693_v15 = vadd.f32 %v2692_v12, %v2691_v8  ;;  %v1178_v16 = vpack.c.bf16 %v3698_v6, %v3694_v4  ;;  %v390_v2 = vld [vmem:[%s3682_s24 + $0xa8] sm:$0xff] }
 0x116   : > { %v1076_v19 = vmax.f32 %v956_v9, 0.0  ;;  %v1092_v20 = vmax.f32 %v1020_v10, 0.0  ;;  %v959_v21 = vadd.f32 %v2645_v14, %v515_v25 }
 0x117   : > { %v1023_v24 = vadd.f32 %v2693_v15, %v3656_v23  ;;  %2730 = vmatprep.subr.bf16.mxu1 %v1178_v16 }
 0x118   : > { %2731 = vmatpush3.bf16.msra.mxu1 %v1170_v13  ;;  %v2646_v36 = vpop.f32.mrb[8].mxu0  ;;  %v2694_v37 = vpop.f32.mrb[8].mxu1  ;;  %v1077_v39 = vmax.f32 %v959_v21, 0.0  ;;  %v3713_v46 = vadd.f32 %v1076_v19, %v371_v18  ;;  %v3715_v25 = vadd.f32 %v1092_v20, %v387_v22 }
 0x119   : > { %v1093_v40 = vmax.f32 %v1023_v24, 0.0  ;;  %v2647_v41 = vpop.f32.mrb[9].mxu0  ;;  %v2695_v42 = vpop.f32.mrb[9].mxu1 }
 0x11a   : > { %v2648_v44 = vadd.f32 %v2647_v41, %v2646_v36  ;;  %v2696_v45 = vadd.f32 %v2695_v42, %v2694_v37  ;;  %v3717_v23 = vadd.f32 %v1077_v39, %v372_v34  ;;  %v2649_v48 = vpop.f32.mrb[10].mxu0  ;;  %v2697_v50 = vpop.f32.mrb[10].mxu1  ;;  %v375_v41 = vld [vmem:[%s3682_s24 + $0x30] sm:$0xff] }
 0x11b   : > { %v3719_v47 = vadd.f32 %v1093_v40, %v388_v35  ;;  %v2650_v53 = vpop.f32.mrb[11].mxu0  ;;  %v2698_v54 = vpop.f32.mrb[11].mxu1 }
 0x11c   : > { %v964_v51 = vadd.f32 %v2648_v44, %v3662_v28  ;;  %v1028_v52 = vadd.f32 %v2696_v45, %v3658_v26  ;;  %v1171_v55 = vpack.c.bf16 %v3717_v23, %v3713_v46  ;;  %v2651_v56 = vadd.f32 %v2650_v53, %v2649_v48  ;;  %v3735_v13 = vpop.permute.xlu0 %549  ;;  %v3751_v40 = vpop.permute.xlu1 %554  ;;  %v391_v45 = vld [vmem:[%s3682_s24 + $0xb0] sm:$0xff]  ;;  %v376_v48 = vld [vmem:[%s3682_s24 + $0x38] sm:$0xff] }
 0x11d   : > { %v2699_v57 = vadd.f32 %v2698_v54, %v2697_v50  ;;  %v1179_v58 = vpack.c.bf16 %v3719_v47, %v3715_v25  ;;  %v392_v50 = vld [vmem:[%s3682_s24 + $0xb8] sm:$0xff] }
 0x11e   : > { %v1078_v61 = vmax.f32 %v964_v51, 0.0  ;;  %v1094_v62 = vmax.f32 %v1028_v52, 0.0  ;;  %v967_v28 = vadd.f32 %v2651_v56, %v3664_v29 }
 0x11f   : > { %v1031_v26 = vadd.f32 %v2699_v57, %v3660_v27  ;;  %2732 = vmatprep.subr.bf16.mxu1 %v1179_v58 }
 0x120   : > { %2733 = vmatpush3.bf16.msra.mxu1 %v1171_v55  ;;  %v2652_v7 = vpop.f32.mrb[12].mxu0  ;;  %v2700_v8 = vpop.f32.mrb[12].mxu1  ;;  %v1079_v9 = vmax.f32 %v967_v28, 0.0  ;;  %v3737_v16 = vadd.f32 %v1078_v61, %v373_v60  ;;  %v3739_v29 = vadd.f32 %v1094_v62, %v389_v63 }
 0x121   : > { %v1095_v10 = vmax.f32 %v1031_v26, 0.0  ;;  %v2653_v11 = vpop.f32.mrb[13].mxu0  ;;  %v2701_v12 = vpop.f32.mrb[13].mxu1 }
 0x122   : > { %v2654_v14 = vadd.f32 %v2653_v11, %v2652_v7  ;;  %v2702_v15 = vadd.f32 %v2701_v12, %v2700_v8  ;;  %4243 = vst [vmem:[#allocation2_spill] sm:$0xff] %v3739_v29  ;;  %v3741_v27 = vadd.f32 %v1079_v9, %v374_v1  ;;  %v2655_v19 = vpop.f32.mrb[14].mxu0  ;;  %v2703_v20 = vpop.f32.mrb[14].mxu1 }
 0x123   : > { %v3743_v18 = vadd.f32 %v1095_v10, %v390_v2  ;;  %v2656_v22 = vpop.f32.mrb[15].mxu0  ;;  %v2704_v34 = vpop.f32.mrb[15].mxu1 }
 0x124   : > { %v972_v21 = vadd.f32 %v2654_v14, %v3670_v32  ;;  %v1036_v24 = vadd.f32 %v2702_v15, %v3666_v30  ;;  %v1172_v35 = vpack.c.bf16 %v3741_v27, %v3737_v16  ;;  %v2657_v36 = vadd.f32 %v2656_v22, %v2655_v19  ;;  %v3759_v57 = vpop.permute.xlu0 %639  ;;  %v3775_v12 = vpop.permute.xlu1 %644  ;;  %v377_v14 = vld [vmem:[%s3682_s24 + $0x40] sm:$0xff] }
 0x125   : > { %4244 = vst [vmem:[#allocation3_spill] sm:$0xff] %v3743_v18  ;;  %v2705_v37 = vadd.f32 %v2704_v34, %v2703_v20  ;;  %v1180_v39 = vpack.c.bf16 %v3743_v18, %v3739_v29  ;;  %v393_v20 = vld [vmem:[%s3682_s24 + $0xc0] sm:$0xff] }
 0x126   : > { %v1080_v42 = vmax.f32 %v972_v21, 0.0  ;;  %v1096_v44 = vmax.f32 %v1036_v24, 0.0  ;;  %v975_v32 = vadd.f32 %v2657_v36, %v3672_v33  ;;  %v378_v21 = vld [vmem:[%s3682_s24 + $0x48] sm:$0xff] }
 0x127   : > { %v1039_v30 = vadd.f32 %v2705_v37, %v3668_v31  ;;  %2734 = vmatprep.subr.bf16.mxu1 %v1180_v39  ;;  %v394_v24 = vld [vmem:[%s3682_s24 + $0xc8] sm:$0xff] }
 0x128   : > { %2735 = vmatpush3.bf16.msra.mxu1 %v1172_v35  ;;  %v2658_v51 = vpop.f32.mrb[16].mxu0  ;;  %v2706_v52 = vpop.f32.mrb[16].mxu1  ;;  %v1081_v53 = vmax.f32 %v975_v32, 0.0  ;;  %v3761_v61 = vadd.f32 %v1080_v42, %v375_v41  ;;  %v3763_v33 = vadd.f32 %v1096_v44, %v391_v45 }
 0x129   : > { %v1097_v54 = vmax.f32 %v1039_v30, 0.0  ;;  %v2659_v55 = vpop.f32.mrb[17].mxu0  ;;  %v2707_v56 = vpop.f32.mrb[17].mxu1 }
 0x12a   : > { %v2660_v58 = vadd.f32 %v2659_v55, %v2658_v51  ;;  %v2708_v60 = vadd.f32 %v2707_v56, %v2706_v52  ;;  %4245 = vst [vmem:[#allocation4_spill] sm:$0xff] %v3763_v33  ;;  %v3765_v31 = vadd.f32 %v1081_v53, %v376_v48  ;;  %v2661_v28 = vpop.f32.mrb[18].mxu0  ;;  %v2709_v26 = vpop.f32.mrb[18].mxu1 }
 0x12b   : > { %v3767_v62 = vadd.f32 %v1097_v54, %v392_v50  ;;  %v2662_v2 = vpop.f32.mrb[19].mxu0  ;;  %v2710_v7 = vpop.f32.mrb[19].mxu1 }
 0x12c   : > { %v980_v63 = vadd.f32 %v2660_v58, %v3690_v0  ;;  %v1044_v1 = vadd.f32 %v2708_v60, %v3675_v38  ;;  %v1173_v8 = vpack.c.bf16 %v3765_v31, %v3761_v61  ;;  %v2663_v9 = vadd.f32 %v2662_v2, %v2661_v28  ;;  %v560_v41 = vpop.permute.xlu0 %559  ;;  %v565_v60 = vpop.permute.xlu1 %564  ;;  %v379_v28 = vld [vmem:[%s3682_s24 + $0x50] sm:$0xff]  ;;  %v380_v2 = vld [vmem:[%s3682_s24 + $0x58] sm:$0xff] }
 0x12d   : > { %4246 = vst [vmem:[#allocation5_spill] sm:$0xff] %v3767_v62  ;;  %v2711_v10 = vadd.f32 %v2710_v7, %v2709_v26  ;;  %v1181_v11 = vpack.c.bf16 %v3767_v62, %v3763_v33  ;;  %v396_v7 = vld [vmem:[%s3682_s24 + $0xd8] sm:$0xff] }
 0x12e   : > { %v1082_v15 = vmax.f32 %v980_v63, 0.0  ;;  %v1098_v19 = vmax.f32 %v1044_v1, 0.0  ;;  %v983_v0 = vadd.f32 %v2663_v9, %v3704_v17 }
 0x12f   : > { %v1047_v38 = vadd.f32 %v2711_v10, %v3684_v49  ;;  %2736 = vmatprep.subr.bf16.mxu1 %v1181_v11 }
 0x130   : > { %2737 = vmatpush3.bf16.msra.mxu1 %v1173_v8  ;;  %v2664_v22 = vpop.f32.mrb[20].mxu0  ;;  %v2712_v34 = vpop.f32.mrb[20].mxu1  ;;  %v1083_v35 = vmax.f32 %v983_v0, 0.0  ;;  %v3783_v32 = vadd.f32 %v1082_v15, %v377_v14  ;;  %v3785_v17 = vadd.f32 %v1098_v19, %v393_v20 }
 0x131   : > { %v1099_v36 = vmax.f32 %v1047_v38, 0.0  ;;  %v2665_v37 = vpop.f32.mrb[21].mxu0  ;;  %v2713_v39 = vpop.f32.mrb[21].mxu1 }
 0x132   : > { %v2666_v42 = vadd.f32 %v2665_v37, %v2664_v22  ;;  %v2714_v44 = vadd.f32 %v2713_v39, %v2712_v34  ;;  %4247 = vst [vmem:[#allocation6_spill] sm:$0xff] %v3785_v17  ;;  %v3787_v49 = vadd.f32 %v1083_v35, %v378_v21  ;;  %v2667_v45 = vpop.f32.mrb[22].mxu0  ;;  %v2715_v48 = vpop.f32.mrb[22].mxu1 }
 0x133   : > { %v3789_v30 = vadd.f32 %v1099_v36, %v394_v24  ;;  %v2668_v52 = vpop.f32.mrb[23].mxu0  ;;  %v2716_v53 = vpop.f32.mrb[23].mxu1 }
 0x134   : > { %v988_v50 = vadd.f32 %v2666_v42, %v3735_v13  ;;  %v1052_v51 = vadd.f32 %v2714_v44, %v3711_v43  ;;  %v1174_v54 = vpack.c.bf16 %v3787_v49, %v3783_v32  ;;  %v2669_v55 = vadd.f32 %v2668_v52, %v2667_v45  ;;  %v395_v43 = vld [vmem:[%s3682_s24 + $0xd0] sm:$0xff]  ;;  %v650_v19 = vpop.permute.xlu0 %649 }
 0x135   : > { %4248 = vst [vmem:[#allocation7_spill] sm:$0xff] %v3789_v30  ;;  %v2717_v56 = vadd.f32 %v2716_v53, %v2715_v48  ;;  %v1182_v58 = vpack.c.bf16 %v3789_v30, %v3785_v17  ;;  %v655_v48 = vpop.permute.xlu1 %654 }
 0x136   : > { %v1084_v26 = vmax.f32 %v988_v50, 0.0  ;;  %v1100_v63 = vmax.f32 %v1052_v51, 0.0  ;;  %v991_v13 = vadd.f32 %v2669_v55, %v3751_v40  ;;  %v381_v50 = vld [vmem:[%s3682_s24 + $0x60] sm:$0xff]  ;;  %v398_v55 = vld [vmem:[%s3682_s24 + $0xe8] sm:$0xff] }
 0x137   : > { %v1055_v1 = vadd.f32 %v2717_v56, %v3727_v59  ;;  %2738 = vmatprep.subr.bf16.mxu1 %v1182_v58 }
 0x138   : > { %2739 = vmatpush3.bf16.msra.mxu1 %v1174_v54  ;;  %v2670_v8 = vpop.f32.mrb[24].mxu0  ;;  %v2718_v9 = vpop.f32.mrb[24].mxu1  ;;  %v1085_v10 = vmax.f32 %v991_v13, 0.0  ;;  %v3803_v20 = vadd.f32 %v1084_v26, %v379_v28  ;;  %v3805_v40 = vadd.f32 %v1100_v63, %v395_v43  ;;  %v382_v54 = vld [vmem:[%s3682_s24 + $0x68] sm:$0xff] }
 0x139   : > { %v1101_v11 = vmax.f32 %v1055_v1, 0.0  ;;  %v2671_v14 = vpop.f32.mrb[25].mxu0  ;;  %v2719_v15 = vpop.f32.mrb[25].mxu1 }
 0x13a   : > { %v2672_v0 = vadd.f32 %v2671_v14, %v2670_v8  ;;  %v2720_v38 = vadd.f32 %v2719_v15, %v2718_v9  ;;  %4249 = vst [vmem:[#allocation8_spill] sm:$0xff] %v3805_v40  ;;  %v3807_v59 = vadd.f32 %v1085_v10, %v380_v2  ;;  %v2673_v24 = vpop.f32.mrb[26].mxu0  ;;  %v2721_v22 = vpop.f32.mrb[26].mxu1 }
 0x13b   : > { %v3809_v21 = vadd.f32 %v1101_v11, %v396_v7  ;;  %v2674_v36 = vpop.f32.mrb[27].mxu0  ;;  %v2722_v37 = vpop.f32.mrb[27].mxu1 }
 0x13c   : > { %v996_v34 = vadd.f32 %v2672_v0, %v560_v41  ;;  %v1060_v35 = vadd.f32 %v2720_v38, %v3759_v57  ;;  %v1175_v39 = vpack.c.bf16 %v3807_v59, %v3803_v20  ;;  %v2675_v42 = vadd.f32 %v2674_v36, %v2673_v24  ;;  %v397_v57 = vld [vmem:[%s3682_s24 + $0xe0] sm:$0xff]  ;;  %v570_v1 = vpop.permute.xlu0 %569  ;;  %v383_v36 = vld [vmem:[%s3682_s24 + $0x70] sm:$0xff] }
 0x13d   : > { %4250 = vst [vmem:[#allocation9_spill] sm:$0xff] %v3809_v21  ;;  %v2723_v44 = vadd.f32 %v2722_v37, %v2721_v22  ;;  %v1183_v45 = vpack.c.bf16 %v3809_v21, %v3805_v40 }
 0x13e   : > { %v1086_v51 = vmax.f32 %v996_v34, 0.0  ;;  %v1102_v52 = vmax.f32 %v1060_v35, 0.0  ;;  %v999_v53 = vadd.f32 %v2675_v42, %v565_v60  ;;  %v575_v35 = vpop.permute.xlu1 %574 }
 0x13f   : > { %v1063_v41 = vadd.f32 %v2723_v44, %v3775_v12  ;;  %2740 = vmatprep.subr.bf16.mxu1 %v1183_v45  ;;  %v399_v45 = vld [vmem:[%s3682_s24 + $0xf0] sm:$0xff] }
 0x140   : > { %2741 = vmatpush3.bf16.msra.mxu1 %v1175_v39  ;;  %v2676_v56 = vpop.f32.mrb[28].mxu0  ;;  %v2724_v58 = vpop.f32.mrb[28].mxu1  ;;  %v1087_v28 = vmax.f32 %v999_v53, 0.0  ;;  %v3821_v7 = vadd.f32 %v1086_v51, %v381_v50  ;;  %v3823_v60 = vadd.f32 %v1102_v52, %v397_v57  ;;  %v400_v50 = vld [vmem:[%s3682_s24 + $0xf8] sm:$0xff] }
 0x141   : > { %v1103_v26 = vmax.f32 %v1063_v41, 0.0  ;;  %v2677_v63 = vpop.f32.mrb[29].mxu0  ;;  %v2725_v13 = vpop.f32.mrb[29].mxu1 }
 0x142   : > { %v2678_v43 = vadd.f32 %v2677_v63, %v2676_v56  ;;  %v2726_v2 = vadd.f32 %v2725_v13, %v2724_v58  ;;  %4251 = vst [vmem:[#allocation10_spill] sm:$0xff] %v3823_v60  ;;  %v3825_v12 = vadd.f32 %v1087_v28, %v382_v54  ;;  %v2679_v9 = vpop.f32.mrb[30].mxu0  ;;  %v2727_v10 = vpop.f32.mrb[30].mxu1  ;;  %v3061_v56 = vld [vmem:[%s4226_s4] ss:$8 sps:$4 sm:$0xff]  }
 0x143   : > { %v3827_v8 = vadd.f32 %v1103_v26, %v398_v55  ;;  %v2680_v15 = vpop.f32.mrb[31].mxu0  ;;  %v2728_v0 = vpop.f32.mrb[31].mxu1  ;;  %v3064_v58 = vld [vmem:[%s4226_s4 + $0x14] ss:$8 sps:$4 sm:$0xff]   ;;  %v3066_v28 = vld [vmem:[%s4226_s4 + $0x10] ss:$8 sps:$4 sm:$0xff]  }
 0x144   : > { %v1004_v11 = vadd.f32 %v2678_v43, %v570_v1  ;;  %v1068_v14 = vadd.f32 %v2726_v2, %v650_v19  ;;  %v1176_v38 = vpack.c.bf16 %v3825_v12, %v3821_v7  ;;  %v2681_v24 = vadd.f32 %v2680_v15, %v2679_v9  ;;  %v384_v19 = vld [vmem:[%s3682_s24 + $0x78] sm:$0xff]  ;;  %v3067_v26 = vld [vmem:[%s4226_s4 + $0x24] ss:$8 sps:$4 sm:$0xff]   ;;  %v3069_v63 = vld [vmem:[%s4226_s4 + $0x20] ss:$8 sps:$4 sm:$0xff]  }
 0x145   : > { %4252 = vst [vmem:[#allocation11_spill] sm:$0xff] %v3827_v8  ;;  %v2729_v22 = vadd.f32 %v2728_v0, %v2727_v10  ;;  %v1184_v34 = vpack.c.bf16 %v3827_v8, %v3823_v60  ;;  %v3070_v13 = vld [vmem:[%s4226_s4 + $0x34] ss:$8 sps:$4 sm:$0xff]   ;;  %v3072_v1 = vld [vmem:[%s4226_s4 + $0x30] ss:$8 sps:$4 sm:$0xff]  }
 0x146   : > { %v1088_v37 = vmax.f32 %v1004_v11, 0.0  ;;  %v1104_v39 = vmax.f32 %v1068_v14, 0.0  ;;  %v1007_v42 = vadd.f32 %v2681_v24, %v575_v35  ;;  %v3073_v43 = vld [vmem:[%s4226_s4 + $0x44] ss:$8 sps:$4 sm:$0xff]   ;;  %v3075_v2 = vld [vmem:[%s4226_s4 + $0x40] ss:$8 sps:$4 sm:$0xff]  }
 0x147   : > { %v1071_v44 = vadd.f32 %v2729_v22, %v655_v48  ;;  %2742 = vmatprep.subr.bf16.mxu1 %v1184_v34  ;;  %v3076_v9 = vld [vmem:[%s4226_s4 + $0x54] ss:$8 sps:$4 sm:$0xff]   ;;  %v3078_v10 = vld [vmem:[%s4226_s4 + $0x50] ss:$8 sps:$4 sm:$0xff]   ;;  %v3079_v11 = vld [vmem:[%s4226_s4 + $0x64] ss:$8 sps:$4 sm:$0xff]  }
 0x148   : > { %2743 = vmatpush3.bf16.msra.mxu1 %v1176_v38  ;;  %v1089_v51 = vmax.f32 %v1007_v42, 0.0  ;;  %v3837_v53 = vadd.f32 %v1088_v37, %v383_v36  ;;  %v3839_v41 = vadd.f32 %v1104_v39, %v399_v45  ;;  %v3081_v14 = vld [vmem:[%s4226_s4 + $0x60] ss:$8 sps:$4 sm:$0xff]   ;;  %v3082_v15 = vld [vmem:[%s4226_s4 + $0x74] ss:$8 sps:$4 sm:$0xff]  }
 0x149   : > { %v1105_v52 = vmax.f32 %v1071_v44, 0.0  ;;  %v3084_v0 = vld [vmem:[%s4226_s4 + $0x70] ss:$8 sps:$4 sm:$0xff]   ;;  %v3085_v38 = vld [vmem:[%s4226_s4 + $0x84] ss:$8 sps:$4 sm:$0xff]  }
 0x14a   : > { %4253 = vst [vmem:[#allocation12_spill] sm:$0xff] %v3839_v41  ;;  %v3841_v57 = vadd.f32 %v1089_v51, %v384_v19  ;;  %v3087_v24 = vld [vmem:[%s4226_s4 + $0x80] ss:$8 sps:$4 sm:$0xff]   ;;  %v3088_v22 = vld [vmem:[%s4226_s4 + $0x94] ss:$8 sps:$4 sm:$0xff]  }
 0x14b   : > { %v3843_v54 = vadd.f32 %v1105_v52, %v400_v50  ;;  %v3090_v34 = vld [vmem:[%s4226_s4 + $0x90] ss:$8 sps:$4 sm:$0xff]   ;;  %v3091_v35 = vld [vmem:[%s4226_s4 + $0xa4] ss:$8 sps:$4 sm:$0xff]   ;;  %v3093_v36 = vld [vmem:[%s4226_s4 + $0xa0] ss:$8 sps:$4 sm:$0xff]  }
 0x14c   : > { %v1177_v55 = vpack.c.bf16 %v3841_v57, %v3837_v53  ;;  %v3094_v37 = vld [vmem:[%s4226_s4 + $0xb4] ss:$8 sps:$4 sm:$0xff]   ;;  %v3096_v39 = vld [vmem:[%s4226_s4 + $0xb0] ss:$8 sps:$4 sm:$0xff]   ;;  %v3097_v42 = vld [vmem:[%s4226_s4 + $0xc4] ss:$8 sps:$4 sm:$0xff]  }
 0x14d   : > { %4254 = vst [vmem:[#allocation13_spill] sm:$0xff] %v3843_v54  ;;  %v1185_v48 = vpack.c.bf16 %v3843_v54, %v3839_v41  ;;  %v3099_v44 = vld [vmem:[%s4226_s4 + $0xc0] ss:$8 sps:$4 sm:$0xff]   ;;  %v3100_v45 = vld [vmem:[%s4226_s4 + $0xd4] ss:$8 sps:$4 sm:$0xff]  }
 0x14e   : > { %v3102_v19 = vld [vmem:[%s4226_s4 + $0xd0] ss:$8 sps:$4 sm:$0xff]   ;;  %v3103_v50 = vld [vmem:[%s4226_s4 + $0xe4] ss:$8 sps:$4 sm:$0xff]   ;;  %v3105_v51 = vld [vmem:[%s4226_s4 + $0xe0] ss:$8 sps:$4 sm:$0xff]  }
 0x14f   : > { %2744 = vmatprep.subr.bf16.mxu1 %v1185_v48  ;;  %v3106_v52 = vld [vmem:[%s4226_s4 + $0xf4] ss:$8 sps:$4 sm:$0xff]   ;;  %v3942_v48 = vpop.permute.xlu0 %1300 }
 0x150   : > { %2745 = vmatpush3.bf16.msra.mxu1 %v1177_v55  ;;  %v3108_v55 = vld [vmem:[%s4226_s4 + $0xf0] ss:$8 sps:$4 sm:$0xff]  }
 0x153   : > { %1571 = vmatmul.mubr.bf16.vlgmr.msra.gmra.mrb[32].mxu1 %v3061_v56  ;;  %v3944_v56 = vpop.permute.xlu1 %1305 }
 0x154   : > { %1578 = vmatprep.mubr.bf16.mxu1 %v3064_v58  ;;  %v1221_v58 = vpop.permute.xlu0 %1220 }
 0x15b   : > { %1579 = vmatmul.mubr.bf16.gmra.mrb[36].mxu1 %v3066_v28  ;;  %v1226_v28 = vpop.permute.xlu1 %1225 }
 0x15c   : > { %1586 = vmatprep.mubr.bf16.mxu1 %v3067_v26  ;;  %v3946_v26 = vpop.permute.xlu0 %1310 }
 0x163   : > { %1587 = vmatmul.mubr.bf16.gmra.mrb[40].mxu1 %v3069_v63  ;;  %v3948_v63 = vpop.permute.xlu1 %1315 }
 0x164   : > { %1594 = vmatprep.mubr.bf16.mxu1 %v3070_v13  ;;  %v1231_v13 = vpop.permute.xlu0 %1230 }
 0x16b   : > { %1595 = vmatmul.mubr.bf16.gmra.mrb[44].mxu1 %v3072_v1  ;;  %v1236_v1 = vpop.permute.xlu1 %1235 }
 0x16c   : > { %1602 = vmatprep.mubr.bf16.mxu1 %v3073_v43  ;;  %v3950_v43 = vpop.permute.xlu0 %1320 }
 0x173   : > { %1603 = vmatmul.mubr.bf16.gmra.mrb[48].mxu1 %v3075_v2  ;;  %v3952_v2 = vpop.permute.xlu1 %1325 }
 0x174   : > { %1610 = vmatprep.mubr.bf16.mxu1 %v3076_v9  ;;  %v1241_v9 = vpop.permute.xlu0 %1240 }
 0x17b   : > { %1611 = vmatmul.mubr.bf16.gmra.mrb[52].mxu1 %v3078_v10 }
 0x17c   : > { %1618 = vmatprep.mubr.bf16.mxu1 %v3079_v11  ;;  %v1246_v11 = vpop.permute.xlu1 %1245 }
 0x183   : > { %1619 = vmatmul.mubr.bf16.gmra.mrb[56].mxu1 %v3081_v14 }
 0x184   : > { %1626 = vmatprep.mubr.bf16.mxu1 %v3082_v15 }
 0x18b   : > { %1627 = vmatmul.mubr.bf16.gmra.mrb[60].mxu1 %v3084_v0 }
 0x18c   : > { %1634 = vmatprep.mubr.bf16.mxu1 %v3085_v38 }
 0x193   : > { %1635 = vmatmul.mubr.bf16.gmra.mrb[64].mxu1 %v3087_v24 }
 0x194   : > { %1642 = vmatprep.mubr.bf16.mxu1 %v3088_v22 }
 0x19b   : > { %1643 = vmatmul.mubr.bf16.gmra.mrb[68].mxu1 %v3090_v34  ;;  %v3954_v34 = vpop.permute.xlu0 %1330 }
 0x19c   : > { %1650 = vmatprep.mubr.bf16.mxu1 %v3091_v35  ;;  %v3111_v35 = vld [vmem:[%s4228_s6 + $0x4] ss:$8 sps:$4 sm:$0xff]  }
 0x19d   : > { %2163 = vmatprep.mubr.bf16.mxu0 %v3111_v35 }
 0x1a3   : > { %1651 = vmatmul.mubr.bf16.gmra.mrb[72].mxu1 %v3093_v36 }
 0x1a4   : > { %1658 = vmatprep.mubr.bf16.mxu1 %v3094_v37  ;;  %v3959_v37 = vpop.permute.xlu1 %1335 }
 0x1ab   : > { %1659 = vmatmul.mubr.bf16.gmra.mrb[76].mxu1 %v3096_v39 }
 0x1ac   : > { %1666 = vmatprep.mubr.bf16.mxu1 %v3097_v42 }
 0x1b3   : > { %1667 = vmatmul.mubr.bf16.gmra.mrb[80].mxu1 %v3099_v44 }
 0x1b4   : > { %1674 = vmatprep.mubr.bf16.mxu1 %v3100_v45 }
 0x1bb   : > { %1675 = vmatmul.mubr.bf16.gmra.mrb[84].mxu1 %v3102_v19 }
 0x1bc   : > { %1682 = vmatprep.mubr.bf16.mxu1 %v3103_v50 }
 0x1c3   : > { %1683 = vmatmul.mubr.bf16.gmra.mrb[88].mxu1 %v3105_v51 }
 0x1c4   : > { %1690 = vmatprep.mubr.bf16.mxu1 %v3106_v52  ;;  %v1251_v52 = vpop.permute.xlu0 %1250 }
 0x1cb   : > { %1691 = vmatmul.mubr.bf16.gmra.mrb[92].mxu1 %v3108_v55 }
 0x226   : > { %v2746_v10 = vpop.f32.mrb[32].mxu1 }
 0x227   : > { %v2747_v14 = vpop.f32.mrb[33].mxu1 }
 0x228   : > { %v2748_v15 = vadd.f32 %v2747_v14, %v2746_v10  ;;  %v2749_v0 = vpop.f32.mrb[34].mxu1  ;;  %v1256_v14 = vpop.permute.xlu1 %1255 }
 0x229   : > { %v2750_v38 = vpop.f32.mrb[35].mxu1 }
 0x22a   : > { %v1573_v24 = vadd.f32 %v2748_v15, %v1221_v58  ;;  %v2751_v22 = vadd.f32 %v2750_v38, %v2749_v0 }
 0x22c   : > { %v1576_v36 = vadd.f32 %v2751_v22, %v1226_v28  ;;  %v1699_v39 = vmax.f32 %v1573_v24, 0.0  ;;  %v3963_v22 = vpop.permute.xlu0 %1340 }
 0x22e   : > { %v1700_v42 = vmax.f32 %v1576_v36, 0.0  ;;  %v2752_v44 = vpop.f32.mrb[36].mxu1 }
 0x22f   : > { %v2753_v45 = vpop.f32.mrb[37].mxu1 }
 0x230   : > { %v3961_v19 = vpack.c.bf16 %v1700_v42, %v1699_v39  ;;  %v2754_v50 = vadd.f32 %v2753_v45, %v2752_v44  ;;  %v2755_v51 = vpop.f32.mrb[38].mxu1  ;;  %v3967_v39 = vpop.permute.xlu1 %1345 }
 0x231   : > { %v2756_v55 = vpop.f32.mrb[39].mxu1 }
 0x232   : > { %v1581_v58 = vadd.f32 %v2754_v50, %v1231_v13  ;;  %v2757_v10 = vadd.f32 %v2756_v55, %v2755_v51  ;;  %v1261_v13 = vpop.permute.xlu0 %1260 }
 0x234   : > { %v1584_v15 = vadd.f32 %v2757_v10, %v1236_v1  ;;  %v1701_v0 = vmax.f32 %v1581_v58, 0.0  ;;  %v1266_v55 = vpop.permute.xlu1 %1265 }
 0x236   : > { %v1702_v38 = vmax.f32 %v1584_v15, 0.0  ;;  %v2758_v28 = vpop.f32.mrb[40].mxu1 }
 0x237   : > { %v2759_v35 = vpop.f32.mrb[41].mxu1 }
 0x238   : > { %v3965_v24 = vpack.c.bf16 %v1702_v38, %v1701_v0  ;;  %v2760_v36 = vadd.f32 %v2759_v35, %v2758_v28  ;;  %v2761_v54 = vpop.f32.mrb[42].mxu1  ;;  %v3971_v35 = vpop.permute.xlu0 %1350 }
 0x239   : > { %v2762_v42 = vpop.f32.mrb[43].mxu1  ;;  %v3973_v21 = vpop.permute.xlu1 %1355 }
 0x23a   : > { %v1589_v44 = vadd.f32 %v2760_v36, %v1241_v9  ;;  %v2763_v45 = vadd.f32 %v2762_v42, %v2761_v54 }
 0x23c   : > { %v1592_v41 = vadd.f32 %v2763_v45, %v1246_v11  ;;  %v1703_v50 = vmax.f32 %v1589_v44, 0.0  ;;  %v1271_v45 = vpop.permute.xlu0 %1270 }
 0x23e   : > { %v1704_v51 = vmax.f32 %v1592_v41, 0.0  ;;  %v2764_v1 = vpop.f32.mrb[44].mxu1 }
 0x23f   : > { %v2765_v58 = vpop.f32.mrb[45].mxu1 }
 0x240   : > { %v3969_v10 = vpack.c.bf16 %v1704_v51, %v1703_v50  ;;  %v2766_v15 = vadd.f32 %v2765_v58, %v2764_v1  ;;  %v2767_v8 = vpop.f32.mrb[46].mxu1  ;;  %v1276_v58 = vpop.permute.xlu1 %1275 }
 0x241   : > { %v2768_v0 = vpop.f32.mrb[47].mxu1 }
 0x242   : > { %v1597_v38 = vadd.f32 %v2766_v15, %v1251_v52  ;;  %v2769_v28 = vadd.f32 %v2768_v0, %v2767_v8 }
 0x244   : > { %v1600_v60 = vadd.f32 %v2769_v28, %v1256_v14  ;;  %v1705_v54 = vmax.f32 %v1597_v38, 0.0  ;;  %v3977_v14 = vpop.permute.xlu0 %1360 }
 0x246   : > { %v1706_v9 = vmax.f32 %v1600_v60, 0.0  ;;  %v2770_v11 = vpop.f32.mrb[48].mxu1 }
 0x247   : > { %v2771_v36 = vpop.f32.mrb[49].mxu1 }
 0x248   : > { %v3975_v41 = vpack.c.bf16 %v1706_v9, %v1705_v54  ;;  %v2772_v42 = vadd.f32 %v2771_v36, %v2770_v11  ;;  %v2773_v44 = vpop.f32.mrb[50].mxu1  ;;  %v3981_v54 = vpop.permute.xlu1 %1365 }
 0x249   : > { %v2774_v50 = vpop.f32.mrb[51].mxu1 }
 0x24a   : > { %v1605_v51 = vadd.f32 %v2772_v42, %v1261_v13  ;;  %v2775_v1 = vadd.f32 %v2774_v50, %v2773_v44  ;;  %v1281_v13 = vpop.permute.xlu0 %1280 }
 0x24c   : > { %v1608_v52 = vadd.f32 %v2775_v1, %v1266_v55  ;;  %v1707_v8 = vmax.f32 %v1605_v51, 0.0  ;;  %v1286_v50 = vpop.permute.xlu1 %1285 }
 0x24e   : > { %v1708_v15 = vmax.f32 %v1608_v52, 0.0  ;;  %v2776_v0 = vpop.f32.mrb[52].mxu1 }
 0x24f   : > { %v2777_v28 = vpop.f32.mrb[53].mxu1 }
 0x250   : > { %v3979_v38 = vpack.c.bf16 %v1708_v15, %v1707_v8  ;;  %v2778_v60 = vadd.f32 %v2777_v28, %v2776_v0  ;;  %v2779_v40 = vpop.f32.mrb[54].mxu1  ;;  %v3985_v28 = vpop.permute.xlu0 %1370 }
 0x251   : > { %v2780_v9 = vpop.f32.mrb[55].mxu1  ;;  %v3987_v33 = vpop.permute.xlu1 %1375 }
 0x252   : > { %v1613_v11 = vadd.f32 %v2778_v60, %v1271_v45  ;;  %v2781_v36 = vadd.f32 %v2780_v9, %v2779_v40 }
 0x254   : > { %v1616_v30 = vadd.f32 %v2781_v36, %v1276_v58  ;;  %v1709_v42 = vmax.f32 %v1613_v11, 0.0  ;;  %v1291_v36 = vpop.permute.xlu0 %1290 }
 0x256   : > { %v1710_v44 = vmax.f32 %v1616_v30, 0.0  ;;  %v2782_v55 = vpop.f32.mrb[56].mxu1 }
 0x257   : > { %v2783_v51 = vpop.f32.mrb[57].mxu1 }
 0x258   : > { %v3983_v1 = vpack.c.bf16 %v1710_v44, %v1709_v42  ;;  %v2784_v52 = vadd.f32 %v2783_v51, %v2782_v55  ;;  %v2785_v17 = vpop.f32.mrb[58].mxu1  ;;  %v1296_v51 = vpop.permute.xlu1 %1295 }
 0x259   : > { %v2786_v8 = vpop.f32.mrb[59].mxu1 }
 0x25a   : > { %v1621_v15 = vadd.f32 %v2784_v52, %v1281_v13  ;;  %v2787_v0 = vadd.f32 %v2786_v8, %v2785_v17 }
 0x25c   : > { %v1624_v62 = vadd.f32 %v2787_v0, %v1286_v50  ;;  %v1711_v40 = vmax.f32 %v1621_v15, 0.0 }
 0x25e   : > { %v1712_v45 = vmax.f32 %v1624_v62, 0.0  ;;  %v2788_v58 = vpop.f32.mrb[60].mxu1 }
 0x25f   : > { %v2789_v60 = vpop.f32.mrb[61].mxu1 }
 0x260   : > { %v3989_v30 = vpack.c.bf16 %v1712_v45, %v1711_v40  ;;  %v2790_v9 = vadd.f32 %v2789_v60, %v2788_v58  ;;  %v2791_v11 = vpop.f32.mrb[62].mxu1 }
 0x261   : > { %v2792_v42 = vpop.f32.mrb[63].mxu1 }
 0x262   : > { %v1629_v44 = vadd.f32 %v2790_v9, %v1291_v36  ;;  %v2793_v55 = vadd.f32 %v2792_v42, %v2791_v11 }
 0x264   : > { %v1632_v13 = vadd.f32 %v2793_v55, %v1296_v51  ;;  %v1713_v17 = vmax.f32 %v1629_v44, 0.0 }
 0x266   : > { %v1714_v52 = vmax.f32 %v1632_v13, 0.0  ;;  %v2794_v8 = vpop.f32.mrb[64].mxu1 }
 0x267   : > { %v2795_v50 = vpop.f32.mrb[65].mxu1 }
 0x268   : > { %v3991_v0 = vpack.c.bf16 %v1714_v52, %v1713_v17  ;;  %v2796_v15 = vadd.f32 %v2795_v50, %v2794_v8  ;;  %v2797_v62 = vpop.f32.mrb[66].mxu1 }
 0x269   : > { %v2798_v18 = vpop.f32.mrb[67].mxu1 }
 0x26a   : > { %v1637_v40 = vadd.f32 %v2796_v15, %v3942_v48  ;;  %v2799_v45 = vadd.f32 %v2798_v18, %v2797_v62 }
 0x26c   : > { %v1640_v58 = vadd.f32 %v2799_v45, %v3944_v56  ;;  %v1715_v60 = vmax.f32 %v1637_v40, 0.0 }
 0x26e   : > { %v1716_v29 = vmax.f32 %v1640_v58, 0.0  ;;  %v2800_v9 = vpop.f32.mrb[68].mxu1 }
 0x26f   : > { %v2801_v11 = vpop.f32.mrb[69].mxu1 }
 0x270   : > { %v2802_v36 = vadd.f32 %v2801_v11, %v2800_v9  ;;  %v2803_v42 = vpop.f32.mrb[70].mxu1  ;;  %v1771_v44 = vpack.c.bf16 %v1716_v29, %v1715_v60 }
 0x271   : > { %v2804_v55 = vpop.f32.mrb[71].mxu1 }
 0x272   : > { %v1645_v51 = vadd.f32 %v2802_v36, %v3946_v26  ;;  %v2805_v13 = vadd.f32 %v2804_v55, %v2803_v42  ;;  %2842 = vmatprep.subr.bf16.mxu0 %v1771_v44 }
 0x273   : > { %2843 = vmatpush3.bf16.msra.mxu0 %v3961_v19 }
 0x274   : > { %v1648_v17 = vadd.f32 %v2805_v13, %v3948_v63  ;;  %v1717_v48 = vmax.f32 %v1645_v51, 0.0 }
 0x276   : > { %v1718_v18 = vmax.f32 %v1648_v17, 0.0  ;;  %v2806_v52 = vpop.f32.mrb[72].mxu1 }
 0x277   : > { %v2807_v56 = vpop.f32.mrb[73].mxu1 }
 0x278   : > { %v2808_v8 = vadd.f32 %v2807_v56, %v2806_v52  ;;  %v2809_v50 = vpop.f32.mrb[74].mxu1  ;;  %v1772_v15 = vpack.c.bf16 %v1718_v18, %v1717_v48 }
 0x279   : > { %v2810_v62 = vpop.f32.mrb[75].mxu1 }
 0x27a   : > { %v1653_v40 = vadd.f32 %v2808_v8, %v3950_v43  ;;  %v2811_v29 = vadd.f32 %v2810_v62, %v2809_v50  ;;  %2844 = vmatprep.subr.bf16.mxu0 %v1772_v15 }
 0x27b   : > { %2845 = vmatpush3.bf16.msra.mxu0 %v3965_v24 }
 0x27c   : > { %v1656_v26 = vadd.f32 %v2811_v29, %v3952_v2  ;;  %v1719_v45 = vmax.f32 %v1653_v40, 0.0 }
 0x27e   : > { %v1720_v19 = vmax.f32 %v1656_v26, 0.0  ;;  %v2812_v58 = vpop.f32.mrb[76].mxu1 }
 0x27f   : > { %v2813_v63 = vpop.f32.mrb[77].mxu1 }
 0x280   : > { %v2814_v60 = vadd.f32 %v2813_v63, %v2812_v58  ;;  %v2815_v9 = vpop.f32.mrb[78].mxu1  ;;  %v1773_v11 = vpack.c.bf16 %v1720_v19, %v1719_v45 }
 0x281   : > { %v2816_v36 = vpop.f32.mrb[79].mxu1 }
 0x282   : > { %v1661_v42 = vadd.f32 %v2814_v60, %v3954_v34  ;;  %v2817_v44 = vadd.f32 %v2816_v36, %v2815_v9  ;;  %2846 = vmatprep.subr.bf16.mxu0 %v1773_v11 }
 0x283   : > { %2847 = vmatpush3.bf16.msra.mxu0 %v3969_v10 }
 0x284   : > { %v1664_v43 = vadd.f32 %v2817_v44, %v3959_v37  ;;  %v1721_v55 = vmax.f32 %v1661_v42, 0.0 }
 0x286   : > { %v1722_v24 = vmax.f32 %v1664_v43, 0.0  ;;  %v2818_v51 = vpop.f32.mrb[80].mxu1 }
 0x287   : > { %v2819_v2 = vpop.f32.mrb[81].mxu1 }
 0x288   : > { %v2820_v13 = vadd.f32 %v2819_v2, %v2818_v51  ;;  %v2821_v17 = vpop.f32.mrb[82].mxu1  ;;  %v1774_v48 = vpack.c.bf16 %v1722_v24, %v1721_v55 }
 0x289   : > { %v2822_v18 = vpop.f32.mrb[83].mxu1 }
 0x28a   : > { %v1669_v52 = vadd.f32 %v2820_v13, %v3963_v22  ;;  %v2823_v56 = vadd.f32 %v2822_v18, %v2821_v17  ;;  %2848 = vmatprep.subr.bf16.mxu0 %v1774_v48 }
 0x28b   : > { %2849 = vmatpush3.bf16.msra.mxu0 %v3975_v41 }
 0x28c   : > { %v1672_v34 = vadd.f32 %v2823_v56, %v3967_v39  ;;  %v1723_v8 = vmax.f32 %v1669_v52, 0.0  ;;  %v3118_v52 = vld [vmem:[%s4228_s6 + $0x34] ss:$8 sps:$4 sm:$0xff]   ;;  %v3120_v56 = vld [vmem:[%s4228_s6 + $0x30] ss:$8 sps:$4 sm:$0xff]  }
 0x28e   : > { %v1724_v10 = vmax.f32 %v1672_v34, 0.0  ;;  %v2824_v50 = vpop.f32.mrb[84].mxu1  ;;  %v3121_v34 = vld [vmem:[%s4228_s6 + $0x44] ss:$8 sps:$4 sm:$0xff]  }
 0x28f   : > { %v2825_v37 = vpop.f32.mrb[85].mxu1 }
 0x290   : > { %v2826_v15 = vadd.f32 %v2825_v37, %v2824_v50  ;;  %v2827_v62 = vpop.f32.mrb[86].mxu1  ;;  %v1775_v40 = vpack.c.bf16 %v1724_v10, %v1723_v8  ;;  %v3123_v8 = vld [vmem:[%s4228_s6 + $0x40] ss:$8 sps:$4 sm:$0xff]   ;;  %v3124_v10 = vld [vmem:[%s4228_s6 + $0x54] ss:$8 sps:$4 sm:$0xff]  }
 0x291   : > { %v2828_v29 = vpop.f32.mrb[87].mxu1  ;;  %v3126_v50 = vld [vmem:[%s4228_s6 + $0x50] ss:$8 sps:$4 sm:$0xff]   ;;  %v3127_v37 = vld [vmem:[%s4228_s6 + $0x64] ss:$8 sps:$4 sm:$0xff]  }
 0x292   : > { %v1677_v26 = vadd.f32 %v2826_v15, %v3971_v35  ;;  %v2829_v45 = vadd.f32 %v2828_v29, %v2827_v62  ;;  %2850 = vmatprep.subr.bf16.mxu0 %v1775_v40  ;;  %v3129_v15 = vld [vmem:[%s4228_s6 + $0x60] ss:$8 sps:$4 sm:$0xff]   ;;  %v3130_v62 = vld [vmem:[%s4228_s6 + $0x74] ss:$8 sps:$4 sm:$0xff]   ;;  %v3132_v40 = vld [vmem:[%s4228_s6 + $0x70] ss:$8 sps:$4 sm:$0xff]  }
 0x293   : > { %2851 = vmatpush3.bf16.msra.mxu0 %v3979_v38  ;;  %v3133_v29 = vld [vmem:[%s4228_s6 + $0x84] ss:$8 sps:$4 sm:$0xff]  }
 0x294   : > { %v1680_v22 = vadd.f32 %v2829_v45, %v3973_v21  ;;  %v1725_v19 = vmax.f32 %v1677_v26, 0.0  ;;  %v3135_v26 = vld [vmem:[%s4228_s6 + $0x80] ss:$8 sps:$4 sm:$0xff]   ;;  %v3136_v45 = vld [vmem:[%s4228_s6 + $0x94] ss:$8 sps:$4 sm:$0xff]  }
 0x296   : > { %v1726_v41 = vmax.f32 %v1680_v22, 0.0  ;;  %v2830_v58 = vpop.f32.mrb[88].mxu1  ;;  %v3138_v22 = vld [vmem:[%s4228_s6 + $0x90] ss:$8 sps:$4 sm:$0xff]  }
 0x297   : > { %v2831_v39 = vpop.f32.mrb[89].mxu1 }
 0x298   : > { %v2832_v63 = vadd.f32 %v2831_v39, %v2830_v58  ;;  %v2833_v60 = vpop.f32.mrb[90].mxu1  ;;  %v1776_v9 = vpack.c.bf16 %v1726_v41, %v1725_v19  ;;  %v3139_v19 = vld [vmem:[%s4228_s6 + $0xa4] ss:$8 sps:$4 sm:$0xff]   ;;  %v3141_v41 = vld [vmem:[%s4228_s6 + $0xa0] ss:$8 sps:$4 sm:$0xff]  }
 0x299   : > { %v2834_v11 = vpop.f32.mrb[91].mxu1  ;;  %v3142_v58 = vld [vmem:[%s4228_s6 + $0xb4] ss:$8 sps:$4 sm:$0xff]   ;;  %v3144_v39 = vld [vmem:[%s4228_s6 + $0xb0] ss:$8 sps:$4 sm:$0xff]  }
 0x29a   : > { %v1685_v36 = vadd.f32 %v2832_v63, %v3977_v14  ;;  %v2835_v42 = vadd.f32 %v2834_v11, %v2833_v60  ;;  %2852 = vmatprep.subr.bf16.mxu0 %v1776_v9  ;;  %v3145_v63 = vld [vmem:[%s4228_s6 + $0xc4] ss:$8 sps:$4 sm:$0xff]   ;;  %v3147_v60 = vld [vmem:[%s4228_s6 + $0xc0] ss:$8 sps:$4 sm:$0xff]   ;;  %v3148_v9 = vld [vmem:[%s4228_s6 + $0xd4] ss:$8 sps:$4 sm:$0xff]  }
 0x29b   : > { %2853 = vmatpush3.bf16.msra.mxu0 %v3983_v1  ;;  %v3150_v11 = vld [vmem:[%s4228_s6 + $0xd0] ss:$8 sps:$4 sm:$0xff]  }
 0x29c   : > { %v1688_v35 = vadd.f32 %v2835_v42, %v3981_v54  ;;  %v1727_v44 = vmax.f32 %v1685_v36, 0.0  ;;  %v3109_v54 = vld [vmem:[%s4228_s6] ss:$8 sps:$4 sm:$0xff]   ;;  %v3151_v36 = vld [vmem:[%s4228_s6 + $0xe4] ss:$8 sps:$4 sm:$0xff]  }
 0x29d   : > { %v3153_v42 = vld [vmem:[%s4228_s6 + $0xe0] ss:$8 sps:$4 sm:$0xff]  }
 0x29e   : > { %v1728_v38 = vmax.f32 %v1688_v35, 0.0  ;;  %v2836_v43 = vpop.f32.mrb[92].mxu1  ;;  %v3154_v35 = vld [vmem:[%s4228_s6 + $0xf4] ss:$8 sps:$4 sm:$0xff]  }
 0x29f   : > { %v2837_v21 = vpop.f32.mrb[93].mxu1 }
 0x2a0   : > { %v2838_v55 = vadd.f32 %v2837_v21, %v2836_v43  ;;  %v2839_v24 = vpop.f32.mrb[94].mxu1  ;;  %v1777_v51 = vpack.c.bf16 %v1728_v38, %v1727_v44  ;;  %v3156_v44 = vld [vmem:[%s4228_s6 + $0xf0] ss:$8 sps:$4 sm:$0xff]  }
 0x2a1   : > { %v2840_v2 = vpop.f32.mrb[95].mxu1 }
 0x2a2   : > { %v1693_v13 = vadd.f32 %v2838_v55, %v3985_v28  ;;  %v2841_v17 = vadd.f32 %v2840_v2, %v2839_v24  ;;  %2854 = vmatprep.subr.bf16.mxu0 %v1777_v51  ;;  %v3112_v28 = vld [vmem:[%s4228_s6 + $0x14] ss:$8 sps:$4 sm:$0xff]   ;;  %v1814_v24 = vpop.permute.xlu0 %1813 }
 0x2a3   : > { %2855 = vmatpush3.bf16.msra.mxu0 %v3989_v30  ;;  %v3115_v30 = vld [vmem:[%s4228_s6 + $0x24] ss:$8 sps:$4 sm:$0xff]  }
 0x2a4   : > { %v1696_v14 = vadd.f32 %v2841_v17, %v3987_v33  ;;  %v1729_v48 = vmax.f32 %v1693_v13, 0.0  ;;  %v3114_v33 = vld [vmem:[%s4228_s6 + $0x10] ss:$8 sps:$4 sm:$0xff]   ;;  %v1819_v17 = vpop.permute.xlu1 %1818 }
 0x2a6   : > { %v1730_v1 = vmax.f32 %v1696_v14, 0.0 }
 0x2a8   : > { %v1778_v18 = vpack.c.bf16 %v1730_v1, %v1729_v48 }
 0x2aa   : > { %2856 = vmatprep.subr.bf16.mxu0 %v1778_v18 }
 0x2ab   : > { %2857 = vmatpush3.bf16.msra.mxu0 %v3991_v0  ;;  %v3117_v0 = vld [vmem:[%s4228_s6 + $0x20] ss:$8 sps:$4 sm:$0xff]  }
 0x2ae   : > { %2164 = vmatmul.mubr.bf16.vlgmr.msra.gmra.mrb[32].mxu0 %v3109_v54 }
 0x2af   : > { %2171 = vmatprep.mubr.bf16.mxu0 %v3112_v28 }
 0x2b6   : > { %2172 = vmatmul.mubr.bf16.gmra.mrb[36].mxu0 %v3114_v33 }
 0x2b7   : > { %2179 = vmatprep.mubr.bf16.mxu0 %v3115_v30 }
 0x2be   : > { %2180 = vmatmul.mubr.bf16.gmra.mrb[40].mxu0 %v3117_v0 }
 0x2bf   : > { %2187 = vmatprep.mubr.bf16.mxu0 %v3118_v52  ;;  %v1824_v52 = vpop.permute.xlu0 %1823 }
 0x2c6   : > { %2188 = vmatmul.mubr.bf16.gmra.mrb[44].mxu0 %v3120_v56 }
 0x2c7   : > { %2195 = vmatprep.mubr.bf16.mxu0 %v3121_v34 }
 0x2ce   : > { %2196 = vmatmul.mubr.bf16.gmra.mrb[48].mxu0 %v3123_v8 }
 0x2cf   : > { %2203 = vmatprep.mubr.bf16.mxu0 %v3124_v10  ;;  %v1829_v10 = vpop.permute.xlu1 %1828 }
 0x2d6   : > { %2204 = vmatmul.mubr.bf16.gmra.mrb[52].mxu0 %v3126_v50 }
 0x2d7   : > { %2211 = vmatprep.mubr.bf16.mxu0 %v3127_v37 }
 0x2de   : > { %2212 = vmatmul.mubr.bf16.gmra.mrb[56].mxu0 %v3129_v15 }
 0x2df   : > { %2219 = vmatprep.mubr.bf16.mxu0 %v3130_v62 }
 0x2e6   : > { %2220 = vmatmul.mubr.bf16.gmra.mrb[60].mxu0 %v3132_v40 }
 0x2e7   : > { %2227 = vmatprep.mubr.bf16.mxu0 %v3133_v29 }
 0x2ee   : > { %2228 = vmatmul.mubr.bf16.gmra.mrb[64].mxu0 %v3135_v26 }
 0x2ef   : > { %2235 = vmatprep.mubr.bf16.mxu0 %v3136_v45  ;;  %v1834_v45 = vpop.permute.xlu0 %1833 }
 0x2f6   : > { %2236 = vmatmul.mubr.bf16.gmra.mrb[68].mxu0 %v3138_v22 }
 0x2f7   : > { %2243 = vmatprep.mubr.bf16.mxu0 %v3139_v19 }
 0x2fe   : > { %2244 = vmatmul.mubr.bf16.gmra.mrb[72].mxu0 %v3141_v41 }
 0x2ff   : > { %2251 = vmatprep.mubr.bf16.mxu0 %v3142_v58  ;;  %v1839_v58 = vpop.permute.xlu1 %1838 }
 0x306   : > { %2252 = vmatmul.mubr.bf16.gmra.mrb[76].mxu0 %v3144_v39 }
 0x307   : > { %2259 = vmatprep.mubr.bf16.mxu0 %v3145_v63 }
 0x30e   : > { %2260 = vmatmul.mubr.bf16.gmra.mrb[80].mxu0 %v3147_v60 }
 0x30f   : > { %2267 = vmatprep.mubr.bf16.mxu0 %v3148_v9 }
 0x316   : > { %2268 = vmatmul.mubr.bf16.gmra.mrb[84].mxu0 %v3150_v11 }
 0x317   : > { %2275 = vmatprep.mubr.bf16.mxu0 %v3151_v36 }
 0x31e   : > { %2276 = vmatmul.mubr.bf16.gmra.mrb[88].mxu0 %v3153_v42 }
 0x31f   : > { %2283 = vmatprep.mubr.bf16.mxu0 %v3154_v35  ;;  %v1844_v35 = vpop.permute.xlu0 %1843 }
 0x326   : > { %2284 = vmatmul.mubr.bf16.gmra.mrb[92].mxu0 %v3156_v44 }
 0x381   : > { %v2858_v38 = vpop.f32.mrb[32].mxu0 }
 0x382   : > { %v2859_v43 = vpop.f32.mrb[33].mxu0 }
 0x383   : > { %v2860_v21 = vadd.f32 %v2859_v43, %v2858_v38  ;;  %v2861_v55 = vpop.f32.mrb[34].mxu0 }
 0x384   : > { %v2862_v51 = vpop.f32.mrb[35].mxu0 }
 0x385   : > { %v2166_v2 = vadd.f32 %v2860_v21, %v1814_v24  ;;  %v2863_v13 = vadd.f32 %v2862_v51, %v2861_v55  ;;  %v1849_v21 = vpop.permute.xlu1 %1848 }
 0x387   : > { %v2292_v14 = vmax.f32 %v2166_v2, 0.0  ;;  %v2169_v48 = vadd.f32 %v2863_v13, %v1819_v17 }
 0x389   : > { %v2324_v1 = vadd.f32 %v2292_v14, %v3692_v3  ;;  %v2293_v18 = vmax.f32 %v2169_v48, 0.0  ;;  %v2864_v54 = vpop.f32.mrb[36].mxu0  ;;  %v1854_v48 = vpop.permute.xlu0 %1853 }
 0x38a   : > { %v2865_v28 = vpop.f32.mrb[37].mxu0 }
 0x38b   : > { %2357 = vst.msk [vmem:[%s4115_s15] sm:$0xff] %vm2356_vm0, %v2324_v1  ;;  %v2325_v33 = vadd.f32 %v2293_v18, %v3696_v5  ;;  %v2866_v30 = vadd.f32 %v2865_v28, %v2864_v54  ;;  %v2867_v0 = vpop.f32.mrb[38].mxu0  ;;  %v1859_v28 = vpop.permute.xlu1 %1858 }
 0x38c   : > { %v2868_v56 = vpop.f32.mrb[39].mxu0 }
 0x38d   : > { %2358 = vst.msk [vmem:[%s4115_s15 + $0x8] sm:$0xff] %vm2356_vm0, %v2325_v33  ;;  %v2174_v34 = vadd.f32 %v2866_v30, %v1824_v52  ;;  %v2869_v8 = vadd.f32 %v2868_v56, %v2867_v0 }
 0x38f   : > { %v2294_v50 = vmax.f32 %v2174_v34, 0.0  ;;  %v2177_v3 = vadd.f32 %v2869_v8, %v1829_v10  ;;  %v1864_v10 = vpop.permute.xlu0 %1863 }
 0x391   : > { %v2326_v37 = vadd.f32 %v2294_v50, %v3713_v46  ;;  %v2295_v15 = vmax.f32 %v2177_v3, 0.0  ;;  %v2870_v62 = vpop.f32.mrb[40].mxu0 }
 0x392   : > { %v2871_v40 = vpop.f32.mrb[41].mxu0 }
 0x393   : > { %2359 = vst.msk [vmem:[%s4115_s15 + $0x10] sm:$0xff] %vm2356_vm0, %v2326_v37  ;;  %v2327_v5 = vadd.f32 %v2295_v15, %v3717_v23  ;;  %v2872_v29 = vadd.f32 %v2871_v40, %v2870_v62  ;;  %v2873_v26 = vpop.f32.mrb[42].mxu0  ;;  %v1869_v15 = vpop.permute.xlu1 %1868 }
 0x394   : > { %v2874_v22 = vpop.f32.mrb[43].mxu0 }
 0x395   : > { %2360 = vst.msk [vmem:[%s4115_s15 + $0x18] sm:$0xff] %vm2356_vm0, %v2327_v5  ;;  %v2182_v19 = vadd.f32 %v2872_v29, %v1834_v45  ;;  %v2875_v41 = vadd.f32 %v2874_v22, %v2873_v26 }
 0x397   : > { %v2296_v39 = vmax.f32 %v2182_v19, 0.0  ;;  %v2185_v46 = vadd.f32 %v2875_v41, %v1839_v58  ;;  %v1874_v19 = vpop.permute.xlu0 %1873 }
 0x399   : > { %v2328_v63 = vadd.f32 %v2296_v39, %v3737_v16  ;;  %v2297_v60 = vmax.f32 %v2185_v46, 0.0  ;;  %v2876_v9 = vpop.f32.mrb[44].mxu0  ;;  %v1879_v46 = vpop.permute.xlu1 %1878 }
 0x39a   : > { %v2877_v11 = vpop.f32.mrb[45].mxu0 }
 0x39b   : > { %2361 = vst.msk [vmem:[%s4115_s15 + $0x20] sm:$0xff] %vm2356_vm0, %v2328_v63  ;;  %v2329_v23 = vadd.f32 %v2297_v60, %v3741_v27  ;;  %v2878_v36 = vadd.f32 %v2877_v11, %v2876_v9  ;;  %v2879_v42 = vpop.f32.mrb[46].mxu0 }
 0x39c   : > { %v2880_v44 = vpop.f32.mrb[47].mxu0 }
 0x39d   : > { %2362 = vst.msk [vmem:[%s4115_s15 + $0x28] sm:$0xff] %vm2356_vm0, %v2329_v23  ;;  %v2190_v38 = vadd.f32 %v2878_v36, %v1844_v35  ;;  %v2881_v43 = vadd.f32 %v2880_v44, %v2879_v42  ;;  %v1884_v35 = vpop.permute.xlu0 %1883 }
 0x39f   : > { %v2298_v55 = vmax.f32 %v2190_v38, 0.0  ;;  %v2193_v16 = vadd.f32 %v2881_v43, %v1849_v21  ;;  %v1889_v21 = vpop.permute.xlu1 %1888 }
 0x3a1   : > { %v2330_v24 = vadd.f32 %v2298_v55, %v3761_v61  ;;  %v2299_v51 = vmax.f32 %v2193_v16, 0.0  ;;  %v2882_v2 = vpop.f32.mrb[48].mxu0 }
 0x3a2   : > { %v2883_v13 = vpop.f32.mrb[49].mxu0 }
 0x3a3   : > { %2363 = vst.msk [vmem:[%s4115_s15 + $0x30] sm:$0xff] %vm2356_vm0, %v2330_v24  ;;  %v2331_v27 = vadd.f32 %v2299_v51, %v3765_v31  ;;  %v2884_v17 = vadd.f32 %v2883_v13, %v2882_v2  ;;  %v2885_v14 = vpop.f32.mrb[50].mxu0 }
 0x3a4   : > { %v2886_v1 = vpop.f32.mrb[51].mxu0 }
 0x3a5   : > { %2364 = vst.msk [vmem:[%s4115_s15 + $0x38] sm:$0xff] %vm2356_vm0, %v2331_v27  ;;  %v2198_v18 = vadd.f32 %v2884_v17, %v1854_v48  ;;  %v2887_v54 = vadd.f32 %v2886_v1, %v2885_v14  ;;  %v1894_v17 = vpop.permute.xlu0 %1893 }
 0x3a7   : > { %v2300_v33 = vmax.f32 %v2198_v18, 0.0  ;;  %v2201_v61 = vadd.f32 %v2887_v54, %v1859_v28  ;;  %v1899_v18 = vpop.permute.xlu1 %1898 }
 0x3a9   : > { %v2332_v30 = vadd.f32 %v2300_v33, %v3783_v32  ;;  %v2301_v0 = vmax.f32 %v2201_v61, 0.0  ;;  %v2888_v52 = vpop.f32.mrb[52].mxu0 }
 0x3aa   : > { %v2889_v56 = vpop.f32.mrb[53].mxu0 }
 0x3ab   : > { %2365 = vst.msk [vmem:[%s4115_s15 + $0x40] sm:$0xff] %vm2356_vm0, %v2332_v30  ;;  %v2333_v31 = vadd.f32 %v2301_v0, %v3787_v49  ;;  %v2890_v34 = vadd.f32 %v2889_v56, %v2888_v52  ;;  %v2891_v8 = vpop.f32.mrb[54].mxu0  ;;  %v1904_v56 = vpop.permute.xlu0 %1903 }
 0x3ac   : > { %v2892_v50 = vpop.f32.mrb[55].mxu0 }
 0x3ad   : > { %2366 = vst.msk [vmem:[%s4115_s15 + $0x48] sm:$0xff] %vm2356_vm0, %v2333_v31  ;;  %v2206_v3 = vadd.f32 %v2890_v34, %v1864_v10  ;;  %v2893_v37 = vadd.f32 %v2892_v50, %v2891_v8  ;;  %v1909_v10 = vpop.permute.xlu1 %1908 }
 0x3af   : > { %v2302_v62 = vmax.f32 %v2206_v3, 0.0  ;;  %v2209_v32 = vadd.f32 %v2893_v37, %v1869_v15 }
 0x3b1   : > { %v2334_v40 = vadd.f32 %v2302_v62, %v3803_v20  ;;  %v2303_v5 = vmax.f32 %v2209_v32, 0.0  ;;  %v2894_v29 = vpop.f32.mrb[56].mxu0 }
 0x3b2   : > { %v2895_v26 = vpop.f32.mrb[57].mxu0 }
 0x3b3   : > { %2367 = vst.msk [vmem:[%s4115_s15 + $0x50] sm:$0xff] %vm2356_vm0, %v2334_v40  ;;  %v2335_v49 = vadd.f32 %v2303_v5, %v3807_v59  ;;  %v2896_v45 = vadd.f32 %v2895_v26, %v2894_v29  ;;  %v2897_v22 = vpop.f32.mrb[58].mxu0  ;;  %v1914_v5 = vpop.permute.xlu0 %1913 }
 0x3b4   : > { %v2898_v41 = vpop.f32.mrb[59].mxu0 }
 0x3b5   : > { %2368 = vst.msk [vmem:[%s4115_s15 + $0x58] sm:$0xff] %vm2356_vm0, %v2335_v49  ;;  %v2214_v58 = vadd.f32 %v2896_v45, %v1874_v19  ;;  %v2899_v39 = vadd.f32 %v2898_v41, %v2897_v22  ;;  %v1919_v45 = vpop.permute.xlu1 %1918  ;;  %v4255_v19 = vld [vmem:[#allocation2_spill] sm:$0xff] }
 0x3b7   : > { %v2304_v63 = vmax.f32 %v2214_v58, 0.0  ;;  %v2217_v20 = vadd.f32 %v2899_v39, %v1879_v46 }
 0x3b9   : > { %v2336_v60 = vadd.f32 %v2304_v63, %v3821_v7  ;;  %v2305_v9 = vmax.f32 %v2217_v20, 0.0  ;;  %v2900_v11 = vpop.f32.mrb[60].mxu0 }
 0x3ba   : > { %v2901_v23 = vpop.f32.mrb[61].mxu0 }
 0x3bb   : > { %2369 = vst.msk [vmem:[%s4115_s15 + $0x60] sm:$0xff] %vm2356_vm0, %v2336_v60  ;;  %v2337_v59 = vadd.f32 %v2305_v9, %v3825_v12  ;;  %v2902_v36 = vadd.f32 %v2901_v23, %v2900_v11  ;;  %v2903_v42 = vpop.f32.mrb[62].mxu0  ;;  %v1924_v9 = vpop.permute.xlu0 %1923 }
 0x3bc   : > { %v2904_v44 = vpop.f32.mrb[63].mxu0 }
 0x3bd   : > { %2370 = vst.msk [vmem:[%s4115_s15 + $0x68] sm:$0xff] %vm2356_vm0, %v2337_v59  ;;  %v2222_v38 = vadd.f32 %v2902_v36, %v1884_v35  ;;  %v2905_v43 = vadd.f32 %v2904_v44, %v2903_v42  ;;  %v1929_v36 = vpop.permute.xlu1 %1928  ;;  %v4257_v44 = vld [vmem:[#allocation4_spill] sm:$0xff] }
 0x3bf   : > { %v2306_v55 = vmax.f32 %v2222_v38, 0.0  ;;  %v2225_v7 = vadd.f32 %v2905_v43, %v1889_v21 }
 0x3c1   : > { %v2338_v16 = vadd.f32 %v2306_v55, %v3837_v53  ;;  %v2307_v24 = vmax.f32 %v2225_v7, 0.0  ;;  %v2906_v51 = vpop.f32.mrb[64].mxu0  ;;  %v4258_v7 = vld [vmem:[#allocation5_spill] sm:$0xff] }
 0x3c2   : > { %v2907_v2 = vpop.f32.mrb[65].mxu0 }
 0x3c3   : > { %2371 = vst.msk [vmem:[%s4115_s15 + $0x70] sm:$0xff] %vm2356_vm0, %v2338_v16  ;;  %v2339_v12 = vadd.f32 %v2307_v24, %v3841_v57  ;;  %v2908_v13 = vadd.f32 %v2907_v2, %v2906_v51  ;;  %v2909_v27 = vpop.f32.mrb[66].mxu0  ;;  %v1934_v2 = vpop.permute.xlu0 %1933 }
 0x3c4   : > { %v2910_v14 = vpop.f32.mrb[67].mxu0 }
 0x3c5   : > { %2372 = vst.msk [vmem:[%s4115_s15 + $0x78] sm:$0xff] %vm2356_vm0, %v2339_v12  ;;  %v2230_v48 = vadd.f32 %v2908_v13, %v1894_v17  ;;  %v2911_v1 = vadd.f32 %v2910_v14, %v2909_v27  ;;  %v1939_v17 = vpop.permute.xlu1 %1938 }
 0x3c7   : > { %v2308_v54 = vmax.f32 %v2230_v48, 0.0  ;;  %v2233_v53 = vadd.f32 %v2911_v1, %v1899_v18  ;;  %v4259_v1 = vld [vmem:[#allocation6_spill] sm:$0xff] }
 0x3c9   : > { %v2340_v28 = vadd.f32 %v2308_v54, %v3694_v4  ;;  %v2309_v33 = vmax.f32 %v2233_v53, 0.0  ;;  %v2912_v61 = vpop.f32.mrb[68].mxu0 }
 0x3ca   : > { %v2913_v30 = vpop.f32.mrb[69].mxu0 }
 0x3cb   : > { %2373 = vst.msk [vmem:[%s4115_s15 + $0x80] sm:$0xff] %vm2356_vm0, %v2340_v28  ;;  %v2341_v57 = vadd.f32 %v2309_v33, %v3698_v6  ;;  %v2914_v0 = vadd.f32 %v2913_v30, %v2912_v61  ;;  %v2915_v52 = vpop.f32.mrb[70].mxu0  ;;  %v4260_v33 = vld [vmem:[#allocation7_spill] sm:$0xff] }
 0x3cc   : > { %v2916_v31 = vpop.f32.mrb[71].mxu0 }
 0x3cd   : > { %2374 = vst.msk [vmem:[%s4115_s15 + $0x88] sm:$0xff] %vm2356_vm0, %v2341_v57  ;;  %v2238_v34 = vadd.f32 %v2914_v0, %v1904_v56  ;;  %v2917_v8 = vadd.f32 %v2916_v31, %v2915_v52  ;;  %v1944_v0 = vpop.permute.xlu0 %1943 }
 0x3cf   : > { %v2310_v50 = vmax.f32 %v2238_v34, 0.0  ;;  %v2241_v4 = vadd.f32 %v2917_v8, %v1909_v10  ;;  %v1949_v34 = vpop.permute.xlu1 %1948 }
 0x3d1   : > { %v2342_v3 = vadd.f32 %v2310_v50, %v3715_v25  ;;  %v2311_v37 = vmax.f32 %v2241_v4, 0.0  ;;  %v2918_v15 = vpop.f32.mrb[72].mxu0  ;;  %v4261_v50 = vld [vmem:[#allocation8_spill] sm:$0xff] }
 0x3d2   : > { %v2919_v62 = vpop.f32.mrb[73].mxu0 }
 0x3d3   : > { %2375 = vst.msk [vmem:[%s4115_s15 + $0x90] sm:$0xff] %vm2356_vm0, %v2342_v3  ;;  %v2343_v6 = vadd.f32 %v2311_v37, %v3719_v47  ;;  %v2920_v32 = vadd.f32 %v2919_v62, %v2918_v15  ;;  %v2921_v40 = vpop.f32.mrb[74].mxu0  ;;  %v4256_v47 = vld [vmem:[#allocation3_spill] sm:$0xff]  ;;  %v4262_v62 = vld [vmem:[#allocation9_spill] sm:$0xff] }
 0x3d4   : > { %v2922_v29 = vpop.f32.mrb[75].mxu0 }
 0x3d5   : > { %2376 = vst.msk [vmem:[%s4115_s15 + $0x98] sm:$0xff] %vm2356_vm0, %v2343_v6  ;;  %v2246_v26 = vadd.f32 %v2920_v32, %v1914_v5  ;;  %v2923_v49 = vadd.f32 %v2922_v29, %v2921_v40  ;;  %v1954_v5 = vpop.permute.xlu0 %1953 }
 0x3d7   : > { %v2312_v22 = vmax.f32 %v2246_v26, 0.0  ;;  %v2249_v25 = vadd.f32 %v2923_v49, %v1919_v45  ;;  %v1959_v45 = vpop.permute.xlu1 %1958 }
 0x3d9   : > { %v2344_v41 = vadd.f32 %v2312_v22, %v4255_v19  ;;  %v2313_v58 = vmax.f32 %v2249_v25, 0.0  ;;  %v2924_v39 = vpop.f32.mrb[76].mxu0  ;;  %v4263_v19 = vld [vmem:[#allocation10_spill] sm:$0xff] }
 0x3da   : > { %v2925_v46 = vpop.f32.mrb[77].mxu0 }
 0x3db   : > { %2377 = vst.msk [vmem:[%s4115_s15 + $0xa0] sm:$0xff] %vm2356_vm0, %v2344_v41  ;;  %v2345_v63 = vadd.f32 %v2313_v58, %v4256_v47  ;;  %v2926_v20 = vadd.f32 %v2925_v46, %v2924_v39  ;;  %v2927_v60 = vpop.f32.mrb[78].mxu0  ;;  %v4264_v47 = vld [vmem:[#allocation11_spill] sm:$0xff] }
 0x3dc   : > { %v2928_v11 = vpop.f32.mrb[79].mxu0 }
 0x3dd   : > { %2378 = vst.msk [vmem:[%s4115_s15 + $0xa8] sm:$0xff] %vm2356_vm0, %v2345_v63  ;;  %v2254_v23 = vadd.f32 %v2926_v20, %v1924_v9  ;;  %v2929_v59 = vadd.f32 %v2928_v11, %v2927_v60  ;;  %v1964_v9 = vpop.permute.xlu0 %1963 }
 0x3df   : > { %v2314_v42 = vmax.f32 %v2254_v23, 0.0  ;;  %v2257_v35 = vadd.f32 %v2929_v59, %v1929_v36  ;;  %v1969_v36 = vpop.permute.xlu1 %1968 }
 0x3e1   : > { %v2346_v38 = vadd.f32 %v2314_v42, %v4257_v44  ;;  %v2315_v43 = vmax.f32 %v2257_v35, 0.0  ;;  %v2930_v21 = vpop.f32.mrb[80].mxu0  ;;  %v4265_v44 = vld [vmem:[#allocation12_spill] sm:$0xff] }
 0x3e2   : > { %v2931_v55 = vpop.f32.mrb[81].mxu0 }
 0x3e3   : > { %2379 = vst.msk [vmem:[%s4115_s15 + $0xb0] sm:$0xff] %vm2356_vm0, %v2346_v38  ;;  %v2347_v16 = vadd.f32 %v2315_v43, %v4258_v7  ;;  %v2932_v24 = vadd.f32 %v2931_v55, %v2930_v21  ;;  %v2933_v51 = vpop.f32.mrb[82].mxu0  ;;  %v4266_v21 = vld [vmem:[#allocation13_spill] sm:$0xff] }
 0x3e4   : > { %v2934_v12 = vpop.f32.mrb[83].mxu0 }
 0x3e5   : > { %2380 = vst.msk [vmem:[%s4115_s15 + $0xb8] sm:$0xff] %vm2356_vm0, %v2347_v16  ;;  %v2262_v13 = vadd.f32 %v2932_v24, %v1934_v2  ;;  %v2935_v27 = vadd.f32 %v2934_v12, %v2933_v51 }
 0x3e7   : > { %v2316_v14 = vmax.f32 %v2262_v13, 0.0  ;;  %v2265_v48 = vadd.f32 %v2935_v27, %v1939_v17 }
 0x3e9   : > { %v2348_v18 = vadd.f32 %v2316_v14, %v4259_v1  ;;  %v2317_v54 = vmax.f32 %v2265_v48, 0.0  ;;  %v2936_v53 = vpop.f32.mrb[84].mxu0 }
 0x3ea   : > { %v2937_v28 = vpop.f32.mrb[85].mxu0 }
 0x3eb   : > { %2381 = vst.msk [vmem:[%s4115_s15 + $0xc0] sm:$0xff] %vm2356_vm0, %v2348_v18  ;;  %v2349_v61 = vadd.f32 %v2317_v54, %v4260_v33  ;;  %v2938_v30 = vadd.f32 %v2937_v28, %v2936_v53  ;;  %v2939_v57 = vpop.f32.mrb[86].mxu0 }
 0x3ec   : > { %v2940_v52 = vpop.f32.mrb[87].mxu0 }
 0x3ed   : > { %2382 = vst.msk [vmem:[%s4115_s15 + $0xc8] sm:$0xff] %vm2356_vm0, %v2349_v61  ;;  %v2270_v56 = vadd.f32 %v2938_v30, %v1944_v0  ;;  %v2941_v31 = vadd.f32 %v2940_v52, %v2939_v57 }
 0x3ef   : > { %v2318_v8 = vmax.f32 %v2270_v56, 0.0  ;;  %v2273_v10 = vadd.f32 %v2941_v31, %v1949_v34 }
 0x3f1   : > { %v2350_v4 = vadd.f32 %v2318_v8, %v4261_v50  ;;  %v2319_v3 = vmax.f32 %v2273_v10, 0.0  ;;  %v2942_v37 = vpop.f32.mrb[88].mxu0 }
 0x3f2   : > { %v2943_v15 = vpop.f32.mrb[89].mxu0 }
 0x3f3   : > { %2383 = vst.msk [vmem:[%s4115_s15 + $0xd0] sm:$0xff] %vm2356_vm0, %v2350_v4  ;;  %v2351_v6 = vadd.f32 %v2319_v3, %v4262_v62  ;;  %v2944_v32 = vadd.f32 %v2943_v15, %v2942_v37  ;;  %v2945_v40 = vpop.f32.mrb[90].mxu0 }
 0x3f4   : > { %v2946_v29 = vpop.f32.mrb[91].mxu0 }
 0x3f5   : > { %2384 = vst.msk [vmem:[%s4115_s15 + $0xd8] sm:$0xff] %vm2356_vm0, %v2351_v6  ;;  %v2278_v26 = vadd.f32 %v2944_v32, %v1954_v5  ;;  %v2947_v49 = vadd.f32 %v2946_v29, %v2945_v40 }
 0x3f7   : > { %v2320_v22 = vmax.f32 %v2278_v26, 0.0  ;;  %v2281_v25 = vadd.f32 %v2947_v49, %v1959_v45 }
 0x3f9   : > { %v2352_v41 = vadd.f32 %v2320_v22, %v4263_v19  ;;  %v2321_v58 = vmax.f32 %v2281_v25, 0.0  ;;  %v2948_v39 = vpop.f32.mrb[92].mxu0 }
 0x3fa   : > { %v2949_v46 = vpop.f32.mrb[93].mxu0 }
 0x3fb   : > { %2385 = vst.msk [vmem:[%s4115_s15 + $0xe0] sm:$0xff] %vm2356_vm0, %v2352_v41  ;;  %v2353_v63 = vadd.f32 %v2321_v58, %v4264_v47  ;;  %v2950_v20 = vadd.f32 %v2949_v46, %v2948_v39  ;;  %v2951_v60 = vpop.f32.mrb[94].mxu0 }
 0x3fc   : > { %v2952_v11 = vpop.f32.mrb[95].mxu0 }
 0x3fd   : > { %2386 = vst.msk [vmem:[%s4115_s15 + $0xe8] sm:$0xff] %vm2356_vm0, %v2353_v63  ;;  %v2286_v23 = vadd.f32 %v2950_v20, %v1964_v9  ;;  %v2953_v59 = vadd.f32 %v2952_v11, %v2951_v60 }
 0x3ff   : > { %v2322_v42 = vmax.f32 %v2286_v23, 0.0  ;;  %v2289_v35 = vadd.f32 %v2953_v59, %v1969_v36 }
 0x401   : > { %v2354_v38 = vadd.f32 %v2322_v42, %v4265_v44  ;;  %v2323_v43 = vmax.f32 %v2289_v35, 0.0 }
 0x403   : > { %2387 = vst.msk [vmem:[%s4115_s15 + $0xf0] sm:$0xff] %vm2356_vm0, %v2354_v38  ;;  %v2355_v55 = vadd.f32 %v2323_v43, %v4266_v21 }
 0x405   : > { %2388 = vst.msk [vmem:[%s4115_s15 + $0xf8] sm:$0xff] %vm2356_vm0, %v2355_v55 }
 0x406 PF: > { %s18_s29 = sadd.s32 1, %s3179_s29   ;;  %s4267_s27 = smov %s3175_s28 }
 0x407   : > { %p15_p5 = scmp.ge.s32.totalorder %s18_s29, 4   ;;  %s4268_s28 = smov %s4270_s30 }
 0x409   :  { %17 = sbr.rel (!%p15_p5) target bundleno = 2 (0x2), region = 85 }

</bundles_post_ra>
